<compile_context>
chip_gen: v7x
topology: tpu7x:2x2x1
jax: 0.10.0
libtpu: 0.0.40
codegen_flags: <defaults>
</compile_context>

<pallas_src>
import jax
import jax.numpy as jnp
from jax.experimental import pallas as pl
from jax.experimental.pallas import tpu as pltpu

# Hyperparameters implied by the module (small, deterministic).
SEQ_LEN = 8
INPUT_SIZE = 16
HIDDEN_SIZE = 32
N_LAYERS = 2          # fused kernel below is written for exactly 2 layers
N_CLASSES = 4
BATCH = 2

BP = 8                # padded batch rows (both branches), sublane multiple
K_PAD = 128           # lane width of the merged-matmul input [h0|h1|x|0]
C_PAD = 128           # lane-dense FC output width (real classes in [:, :N_CLASSES])


# ---------------------------------------------------------------------------
# Fused kernel: 2-layer LSTM over all T steps + final Linear, single call.
# ---------------------------------------------------------------------------
def _siamese_fused_kernel(x1_ref, x2_ref, wstep_ref, b0_ref, b1_ref,
                          wfc_ref, bfc_ref, out_ref, u_ref, xall_ref, fc_ref):
    f32, bf16 = jnp.float32, jnp.bfloat16
    BPk = out_ref.shape[0]
    H = b0_ref.shape[1] // 4
    T = wfc_ref.shape[0] // H
    I = x1_ref.shape[1] // T
    B1, B2 = x1_ref.shape[0], x2_ref.shape[0]

    # Hoisted reused operands (wstep = 16 vregs; well under the 64-vreg budget).
    wstep = wstep_ref[...]                     # (K_PAD, 8H) bf16, static per step
    b0 = b0_ref[...]                           # (1, 4H) f32
    b1 = b1_ref[...]                           # (1, 4H) f32

    # Zero-init scratches; place both branches' flattened inputs into one slab
    # (padding rows stay zero -> their garbage outputs are sliced off in JAX).
    u_ref[...] = jnp.zeros_like(u_ref)
    xall_ref[...] = jnp.zeros_like(xall_ref)
    fc_ref[...] = jnp.zeros_like(fc_ref)
    xall_ref[0:B1, :] = x1_ref[...]
    xall_ref[B1:B1 + B2, :] = x2_ref[...]

    def cell(gates, c_prev):
        # Gate columns packed [i, f, o, g]: one 3H sigmoid + one H tanh (EUP).
        sig = jax.nn.sigmoid(gates[:, 0:3 * H])
        g_g = jnp.tanh(gates[:, 3 * H:4 * H])
        i_g = sig[:, 0:H]
        f_g = sig[:, H:2 * H]
        o_g = sig[:, 2 * H:3 * H]
        c_new = f_g * c_prev + i_g * g_g
        h_new = o_g * jnp.tanh(c_new)
        return h_new, c_new

    # Prologue: same merged push with h0 = h1 = 0 yields g0(0) in the right half.
    u_ref[:, 2 * H:2 * H + I] = xall_ref[:, 0:I]
    res = jnp.dot(u_ref[...].astype(bf16), wstep, preferred_element_type=f32)
    g0_pre = res[:, 4 * H:8 * H]

    h1 = jnp.zeros((BPk, H), f32)
    c0 = jnp.zeros((BPk, H), f32)
    c1 = jnp.zeros((BPk, H), f32)

    for t in range(T):                    # static unroll: recurrence is sequential
        # Layer-0 cell at step t (pre-gates came out of the previous push).
        h0, c0 = cell(g0_pre + b0, c0)

        # Build merged-matmul input in place: [h0_t | h1_{t-1} | x_{t+1} | 0].
        u_ref[:, 0:H] = h0
        u_ref[:, H:2 * H] = h1
        if t + 1 < T:
            u_ref[:, 2 * H:2 * H + I] = xall_ref[:, (t + 1) * I:(t + 2) * I]

        # ONE MXU push per step: cols 0:4H -> g1(t), cols 4H:8H -> g0(t+1).
        res = jnp.dot(u_ref[...].astype(bf16), wstep, preferred_element_type=f32)

        # Layer-1 cell at step t.
        h1, c1 = cell(res[:, 0:4 * H] + b1, c1)
        g0_pre = res[:, 4 * H:8 * H]

        # Stash h1_t (t-major, matching torch reshape(B, T*H)) for the fused FC.
        fc_ref[:, t * H:(t + 1) * H] = h1

    # Fused FC: single (BP, T*H) @ (T*H, 128) push; single lane-dense HBM store.
    logits = jnp.dot(fc_ref[...].astype(bf16), wfc_ref[...],
                     preferred_element_type=f32) + bfc_ref[...]
    out_ref[...] = logits.astype(out_ref.dtype)


def _siamese_pallas(x1, x2, kp):
    """x1, x2: (B, T*I) f32 flattened inputs for the two Siamese branches."""
    vmem = pl.BlockSpec(memory_space=pltpu.MemorySpace.VMEM)
    kpad = kp["wstep"].shape[0]
    th = kp["wfc"].shape[0]
    return pl.pallas_call(
        _siamese_fused_kernel,
        out_shape=jax.ShapeDtypeStruct((BP, C_PAD), jnp.float32),
        in_specs=[vmem] * 7,
        out_specs=vmem,
        scratch_shapes=[
            pltpu.VMEM((BP, kpad), jnp.float32),         # u: [h0 | h1 | x_{t+1} | 0]
            pltpu.VMEM((BP, x1.shape[1]), jnp.float32),  # both branches' inputs
            pltpu.VMEM((BP, th), jnp.float32),           # h1 slab feeding the FC
        ],
    )(x1, x2, kp["wstep"], kp["b0"], kp["b1"], kp["wfc"], kp["bfc"])


# ---------------------------------------------------------------------------
# Parameters: raw PyTorch-layout weights (for the reference) + packed kernel
# weights (gate-reordered, transposed, merged, bf16 for MXU operands).
# ---------------------------------------------------------------------------
def _reorder_gates(w):
    """PyTorch gate chunks [i, f, g, o] -> kernel order [i, f, o, g] (axis 0)."""
    H = w.shape[0] // 4
    return jnp.concatenate([w[0:H], w[H:2 * H], w[3 * H:4 * H], w[2 * H:3 * H]],
                           axis=0)


def pack_params(raw):
    H, I, T, C = HIDDEN_SIZE, INPUT_SIZE, SEQ_LEN, N_CLASSES
    assert 2 * H + I <= K_PAD and 4 * H * 2 == 256 and C <= C_PAD

    w0x = _reorder_gates(raw["w_ih0"]).T      # (I, 4H)
    w0h = _reorder_gates(raw["w_hh0"]).T      # (H, 4H)
    w1x = _reorder_gates(raw["w_ih1"]).T      # (H, 4H)
    w1h = _reorder_gates(raw["w_hh1"]).T      # (H, 4H)

    # Merged per-step weight: rows = [h0-slot | h1-slot | x-slot | zero pad],
    # cols = [layer-1 gates | layer-0 pre-gates of the NEXT step].
    wstep = jnp.zeros((K_PAD, 8 * H), jnp.float32)
    wstep = wstep.at[0:H, 0:4 * H].set(w1x)
    wstep = wstep.at[0:H, 4 * H:8 * H].set(w0h)
    wstep = wstep.at[H:2 * H, 0:4 * H].set(w1h)
    wstep = wstep.at[2 * H:2 * H + I, 4 * H:8 * H].set(w0x)

    b0 = _reorder_gates(raw["b_ih0"] + raw["b_hh0"]).reshape(1, 4 * H)
    b1 = _reorder_gates(raw["b_ih1"] + raw["b_hh1"]).reshape(1, 4 * H)
    wfc = jnp.pad(raw["w_fc"].T, ((0, 0), (0, C_PAD - C)))          # (T*H, 128)
    bfc = jnp.pad(raw["b_fc"].reshape(1, C), ((0, 0), (0, C_PAD - C)))

    return {
        "wstep": wstep.astype(jnp.bfloat16),    # (128, 256) bf16
        "b0": b0, "b1": b1,                     # (1, 128) f32 each
        "wfc": wfc.astype(jnp.bfloat16),        # (256, 128) bf16
        "bfc": bfc,                             # (1, 128) f32
    }


def init_params(key):
    H, I, T, C = HIDDEN_SIZE, INPUT_SIZE, SEQ_LEN, N_CLASSES
    bound = 1.0 / jnp.sqrt(jnp.float32(H))
    ks = jax.random.split(key, 10)

    def u(k, shape, b):
        return jax.random.uniform(k, shape, jnp.float32, -b, b)

    raw = {
        "w_ih0": u(ks[0], (4 * H, I), bound), "w_hh0": u(ks[1], (4 * H, H), bound),
        "b_ih0": u(ks[2], (4 * H,), bound),   "b_hh0": u(ks[3], (4 * H,), bound),
        "w_ih1": u(ks[4], (4 * H, H), bound), "w_hh1": u(ks[5], (4 * H, H), bound),
        "b_ih1": u(ks[6], (4 * H,), bound),   "b_hh1": u(ks[7], (4 * H,), bound),
    }
    fcb = 1.0 / jnp.sqrt(jnp.float32(H * T))
    raw["w_fc"] = u(ks[8], (C, H * T), fcb)
    raw["b_fc"] = u(ks[9], (C,), fcb)
    return raw, pack_params(raw)


# ---------------------------------------------------------------------------
# Forward pass: both Siamese branches in ONE kernel call (shared weights).
# ---------------------------------------------------------------------------
@jax.jit
def siamese_forward(packed, input1, input2):
    B1, B2 = input1.shape[0], input2.shape[0]
    assert B1 + B2 <= BP
    x1 = input1.astype(jnp.float32).reshape(B1, SEQ_LEN * INPUT_SIZE)  # free reshape
    x2 = input2.astype(jnp.float32).reshape(B2, SEQ_LEN * INPUT_SIZE)
    logits = _siamese_pallas(x1, x2, packed)               # (BP, 128)
    return logits[:B1, :N_CLASSES], logits[B1:B1 + B2, :N_CLASSES]
    # TODO(synk): nn.Dropout(p=0.2) exists in __init__ but is never applied in
    # the reference forward(), so it is intentionally omitted here.


# ---------------------------------------------------------------------------
# Pure-JAX reference from the RAW PyTorch-layout weights (independent of the
# kernel's packing). Matmul operands are cast to bf16 (f32 accumulation) to
# mirror the kernel's MXU precision; element-wise math stays f32.
# ---------------------------------------------------------------------------
def _ref_branch(raw, x):
    H, T = HIDDEN_SIZE, SEQ_LEN
    bf16 = jnp.bfloat16
    B = x.shape[0]

    def mm(a, w):
        return jnp.dot(a.astype(bf16), w.astype(bf16),
                       preferred_element_type=jnp.float32)

    def cell(g, c):            # PyTorch gate order [i, f, g, o]
        i = jax.nn.sigmoid(g[:, 0:H])
        f = jax.nn.sigmoid(g[:, H:2 * H])
        gg = jnp.tanh(g[:, 2 * H:3 * H])
        o = jax.nn.sigmoid(g[:, 3 * H:4 * H])
        c_new = f * c + i * gg
        return o * jnp.tanh(c_new), c_new

    h0 = c0 = h1 = c1 = jnp.zeros((B, H), jnp.float32)
    b0 = (raw["b_ih0"] + raw["b_hh0"])[None, :]
    b1 = (raw["b_ih1"] + raw["b_hh1"])[None, :]
    outs = []
    for t in range(T):
        g0 = mm(x[:, t], raw["w_ih0"].T) + mm(h0, raw["w_hh0"].T) + b0
        h0, c0 = cell(g0, c0)
        g1 = mm(h0, raw["w_ih1"].T) + mm(h1, raw["w_hh1"].T) + b1
        h1, c1 = cell(g1, c1)
        outs.append(h1)
    flat = jnp.concatenate(outs, axis=-1)                  # (B, T*H), t-major
    return mm(flat, raw["w_fc"].T) + raw["b_fc"][None, :]


# ---------------------------------------------------------------------------
if __name__ == "__main__":
    key = jax.random.PRNGKey(0)
    kx1, kx2, kp = jax.random.split(key, 3)
    x1 = jax.random.normal(kx1, (BATCH, SEQ_LEN, INPUT_SIZE), jnp.float32)
    x2 = jax.random.normal(kx2, (BATCH, SEQ_LEN, INPUT_SIZE), jnp.float32)
    raw, packed = init_params(kp)

    o1, o2 = siamese_forward(packed, x1, x2)
    jax.block_until_ready((o1, o2))
    assert o1.shape == (BATCH, N_CLASSES) and o2.shape == (BATCH, N_CLASSES)

    r1 = _ref_branch(raw, x1)
    r2 = _ref_branch(raw, x2)
    assert jnp.allclose(o1, r1, atol=1e-2, rtol=1e-2), (o1, r1)
    assert jnp.allclose(o2, r2, atol=1e-2, rtol=1e-2), (o2, r2)

    print("KERNEL_OK")
</pallas_src>

<mosaic_0001>
module attributes {stable_mosaic.version = 11 : i64} {
  func.func @_siamese_fused_kernel(%arg0: memref<2x128xf32, #tpu.memory_space<vmem>>, %arg1: memref<2x128xf32, #tpu.memory_space<vmem>>, %arg2: memref<128x256xbf16, #tpu.memory_space<vmem>>, %arg3: memref<1x128xf32, #tpu.memory_space<vmem>>, %arg4: memref<1x128xf32, #tpu.memory_space<vmem>>, %arg5: memref<256x128xbf16, #tpu.memory_space<vmem>>, %arg6: memref<1x128xf32, #tpu.memory_space<vmem>>, %arg7: memref<8x128xf32, #tpu.memory_space<vmem>>, %arg8: memref<8x128xf32, #tpu.memory_space<vmem>>, %arg9: memref<8x128xf32, #tpu.memory_space<vmem>>, %arg10: memref<8x256xf32, #tpu.memory_space<vmem>>) attributes {dimension_semantics = [], scalar_prefetch = 0 : i64, scratch_operands = 3 : i64, tpu.core_type = #tpu.core_type<tc>} {
    %c0 = arith.constant 0 : index
    %c0_0 = arith.constant 0 : index
    %0 = vector.load %arg2[%c0, %c0_0] : memref<128x256xbf16, #tpu.memory_space<vmem>>, vector<128x256xbf16>
    %c0_1 = arith.constant 0 : index
    %c0_2 = arith.constant 0 : index
    %1 = vector.load %arg3[%c0_1, %c0_2] : memref<1x128xf32, #tpu.memory_space<vmem>>, vector<1x128xf32>
    %c0_3 = arith.constant 0 : index
    %c0_4 = arith.constant 0 : index
    %2 = vector.load %arg4[%c0_3, %c0_4] : memref<1x128xf32, #tpu.memory_space<vmem>>, vector<1x128xf32>
    %cst = arith.constant 0.000000e+00 : f32
    %3 = vector.broadcast %cst : f32 to vector<8x128xf32>
    %c0_5 = arith.constant 0 : index
    %c0_6 = arith.constant 0 : index
    %4 = vector.load %arg8[%c0_5, %c0_6] : memref<8x128xf32, #tpu.memory_space<vmem>>, vector<8x128xf32>
    tpu.vector_store %arg8[%c0_5, %c0_6], %3 {strides = array<i32>} : memref<8x128xf32, #tpu.memory_space<vmem>>, vector<8x128xf32>,
    %cst_7 = arith.constant 0.000000e+00 : f32
    %5 = vector.broadcast %cst_7 : f32 to vector<8x128xf32>
    %c0_8 = arith.constant 0 : index
    %c0_9 = arith.constant 0 : index
    %6 = vector.load %arg9[%c0_8, %c0_9] : memref<8x128xf32, #tpu.memory_space<vmem>>, vector<8x128xf32>
    tpu.vector_store %arg9[%c0_8, %c0_9], %5 {strides = array<i32>} : memref<8x128xf32, #tpu.memory_space<vmem>>, vector<8x128xf32>,
    %cst_10 = arith.constant 0.000000e+00 : f32
    %7 = vector.broadcast %cst_10 : f32 to vector<8x256xf32>
    %c0_11 = arith.constant 0 : index
    %c0_12 = arith.constant 0 : index
    %8 = vector.load %arg10[%c0_11, %c0_12] : memref<8x256xf32, #tpu.memory_space<vmem>>, vector<8x256xf32>
    tpu.vector_store %arg10[%c0_11, %c0_12], %7 {strides = array<i32>} : memref<8x256xf32, #tpu.memory_space<vmem>>, vector<8x256xf32>,
    %c0_13 = arith.constant 0 : index
    %c0_14 = arith.constant 0 : index
    %9 = vector.load %arg0[%c0_13, %c0_14] : memref<2x128xf32, #tpu.memory_space<vmem>>, vector<2x128xf32>
    %c0_15 = arith.constant 0 : index
    %c0_16 = arith.constant 0 : index
    %10 = vector.load %arg9[%c0_15, %c0_16] : memref<8x128xf32, #tpu.memory_space<vmem>>, vector<2x128xf32>
    tpu.vector_store %arg9[%c0_15, %c0_16], %9 {strides = array<i32>} : memref<8x128xf32, #tpu.memory_space<vmem>>, vector<2x128xf32>,
    %c0_17 = arith.constant 0 : index
    %c0_18 = arith.constant 0 : index
    %11 = vector.load %arg1[%c0_17, %c0_18] : memref<2x128xf32, #tpu.memory_space<vmem>>, vector<2x128xf32>
    %c2 = arith.constant 2 : index
    %c0_19 = arith.constant 0 : index
    %12 = vector.load %arg9[%c2, %c0_19] : memref<8x128xf32, #tpu.memory_space<vmem>>, vector<2x128xf32>
    tpu.vector_store %arg9[%c2, %c0_19], %11 {strides = array<i32>} : memref<8x128xf32, #tpu.memory_space<vmem>>, vector<2x128xf32>,
    %c0_20 = arith.constant 0 : index
    %c0_21 = arith.constant 0 : index
    %13 = vector.load %arg9[%c0_20, %c0_21] : memref<8x128xf32, #tpu.memory_space<vmem>>, vector<8x16xf32>
    %c0_22 = arith.constant 0 : index
    %c64 = arith.constant 64 : index
    %14 = vector.load %arg8[%c0_22, %c64] : memref<8x128xf32, #tpu.memory_space<vmem>>, vector<8x16xf32>
    tpu.vector_store %arg8[%c0_22, %c64], %13 {strides = array<i32>} : memref<8x128xf32, #tpu.memory_space<vmem>>, vector<8x16xf32>,
    %c0_23 = arith.constant 0 : index
    %c0_24 = arith.constant 0 : index
    %15 = vector.load %arg8[%c0_23, %c0_24] : memref<8x128xf32, #tpu.memory_space<vmem>>, vector<8x128xf32>
    %16 = arith.truncf %15 : vector<8x128xf32> to vector<8x128xbf16>
    %cst_25 = arith.constant dense<0.000000e+00> : vector<8x256xf32>
    %17 = tpu.matmul %16, %0, %cst_25 {dimension_numbers = #tpu.dot_dimension_numbers<[1], [0], [0], [1], [0, 0, 1, 1], [], []>} : vector<8x128xbf16>, vector<128x256xbf16>, vector<8x256xf32> -> vector<8x256xf32>
    %18 = vector.extract_strided_slice %17 {offsets = [0, 128], sizes = [8, 128], strides = [1, 1]} : vector<8x256xf32> to vector<8x128xf32>
    %cst_26 = arith.constant 0.000000e+00 : f32
    %19 = vector.broadcast %cst_26 : f32 to vector<8x32xf32>
    %cst_27 = arith.constant 0.000000e+00 : f32
    %20 = vector.broadcast %cst_27 : f32 to vector<8x32xf32>
    %cst_28 = arith.constant 0.000000e+00 : f32
    %21 = vector.broadcast %cst_28 : f32 to vector<8x32xf32>
    %22 = vector.broadcast %1 : vector<1x128xf32> to vector<8x128xf32>
    %23 = arith.addf %18, %22 : vector<8x128xf32>
    %24 = vector.extract_strided_slice %23 {offsets = [0, 0], sizes = [8, 96], strides = [1, 1]} : vector<8x128xf32> to vector<8x96xf32>
    %25 = arith.negf %24 : vector<8x96xf32>
    %26 = math.exp %25 : vector<8x96xf32>
    %cst_29 = arith.constant 1.000000e+00 : f32
    %27 = vector.broadcast %cst_29 : f32 to vector<8x96xf32>
    %28 = arith.addf %27, %26 : vector<8x96xf32>
    %29 = arith.divf %27, %28 : vector<8x96xf32>
    %30 = vector.extract_strided_slice %23 {offsets = [0, 96], sizes = [8, 32], strides = [1, 1]} : vector<8x128xf32> to vector<8x32xf32>
    %31 = math.tanh %30 : vector<8x32xf32>
    %32 = vector.extract_strided_slice %29 {offsets = [0, 0], sizes = [8, 32], strides = [1, 1]} : vector<8x96xf32> to vector<8x32xf32>
    %33 = vector.extract_strided_slice %29 {offsets = [0, 32], sizes = [8, 32], strides = [1, 1]} : vector<8x96xf32> to vector<8x32xf32>
    %34 = vector.extract_strided_slice %29 {offsets = [0, 64], sizes = [8, 32], strides = [1, 1]} : vector<8x96xf32> to vector<8x32xf32>
    %35 = arith.mulf %33, %20 : vector<8x32xf32>
    %36 = arith.mulf %32, %31 : vector<8x32xf32>
    %37 = arith.addf %35, %36 : vector<8x32xf32>
    %38 = math.tanh %37 : vector<8x32xf32>
    %39 = arith.mulf %34, %38 : vector<8x32xf32>
    %c0_30 = arith.constant 0 : index
    %c0_31 = arith.constant 0 : index
    %40 = vector.load %arg8[%c0_30, %c0_31] : memref<8x128xf32, #tpu.memory_space<vmem>>, vector<8x32xf32>
    tpu.vector_store %arg8[%c0_30, %c0_31], %39 {strides = array<i32>} : memref<8x128xf32, #tpu.memory_space<vmem>>, vector<8x32xf32>,
    %c0_32 = arith.constant 0 : index
    %c32 = arith.constant 32 : index
    %41 = vector.load %arg8[%c0_32, %c32] : memref<8x128xf32, #tpu.memory_space<vmem>>, vector<8x32xf32>
    tpu.vector_store %arg8[%c0_32, %c32], %19 {strides = array<i32>} : memref<8x128xf32, #tpu.memory_space<vmem>>, vector<8x32xf32>,
    %c0_33 = arith.constant 0 : index
    %c16 = arith.constant 16 : index
    %42 = vector.load %arg9[%c0_33, %c16] : memref<8x128xf32, #tpu.memory_space<vmem>>, vector<8x16xf32>
    %c0_34 = arith.constant 0 : index
    %c64_35 = arith.constant 64 : index
    %43 = vector.load %arg8[%c0_34, %c64_35] : memref<8x128xf32, #tpu.memory_space<vmem>>, vector<8x16xf32>
    tpu.vector_store %arg8[%c0_34, %c64_35], %42 {strides = array<i32>} : memref<8x128xf32, #tpu.memory_space<vmem>>, vector<8x16xf32>,
    %c0_36 = arith.constant 0 : index
    %c0_37 = arith.constant 0 : index
    %44 = vector.load %arg8[%c0_36, %c0_37] : memref<8x128xf32, #tpu.memory_space<vmem>>, vector<8x128xf32>
    %45 = arith.truncf %44 : vector<8x128xf32> to vector<8x128xbf16>
    %cst_38 = arith.constant dense<0.000000e+00> : vector<8x256xf32>
    %46 = tpu.matmul %45, %0, %cst_38 {dimension_numbers = #tpu.dot_dimension_numbers<[1], [0], [0], [1], [0, 0, 1, 1], [], []>} : vector<8x128xbf16>, vector<128x256xbf16>, vector<8x256xf32> -> vector<8x256xf32>
    %47 = vector.extract_strided_slice %46 {offsets = [0, 0], sizes = [8, 128], strides = [1, 1]} : vector<8x256xf32> to vector<8x128xf32>
    %48 = vector.broadcast %2 : vector<1x128xf32> to vector<8x128xf32>
    %49 = arith.addf %47, %48 : vector<8x128xf32>
    %50 = vector.extract_strided_slice %49 {offsets = [0, 0], sizes = [8, 96], strides = [1, 1]} : vector<8x128xf32> to vector<8x96xf32>
    %51 = arith.negf %50 : vector<8x96xf32>
    %52 = math.exp %51 : vector<8x96xf32>
    %cst_39 = arith.constant 1.000000e+00 : f32
    %53 = vector.broadcast %cst_39 : f32 to vector<8x96xf32>
    %54 = arith.addf %53, %52 : vector<8x96xf32>
    %55 = arith.divf %53, %54 : vector<8x96xf32>
    %56 = vector.extract_strided_slice %49 {offsets = [0, 96], sizes = [8, 32], strides = [1, 1]} : vector<8x128xf32> to vector<8x32xf32>
    %57 = math.tanh %56 : vector<8x32xf32>
    %58 = vector.extract_strided_slice %55 {offsets = [0, 0], sizes = [8, 32], strides = [1, 1]} : vector<8x96xf32> to vector<8x32xf32>
    %59 = vector.extract_strided_slice %55 {offsets = [0, 32], sizes = [8, 32], strides = [1, 1]} : vector<8x96xf32> to vector<8x32xf32>
    %60 = vector.extract_strided_slice %55 {offsets = [0, 64], sizes = [8, 32], strides = [1, 1]} : vector<8x96xf32> to vector<8x32xf32>
    %61 = arith.mulf %59, %21 : vector<8x32xf32>
    %62 = arith.mulf %58, %57 : vector<8x32xf32>
    %63 = arith.addf %61, %62 : vector<8x32xf32>
    %64 = math.tanh %63 : vector<8x32xf32>
    %65 = arith.mulf %60, %64 : vector<8x32xf32>
    %66 = vector.extract_strided_slice %46 {offsets = [0, 128], sizes = [8, 128], strides = [1, 1]} : vector<8x256xf32> to vector<8x128xf32>
    %c0_40 = arith.constant 0 : index
    %c0_41 = arith.constant 0 : index
    %67 = vector.load %arg10[%c0_40, %c0_41] : memref<8x256xf32, #tpu.memory_space<vmem>>, vector<8x32xf32>
    tpu.vector_store %arg10[%c0_40, %c0_41], %65 {strides = array<i32>} : memref<8x256xf32, #tpu.memory_space<vmem>>, vector<8x32xf32>,
    %68 = vector.broadcast %1 : vector<1x128xf32> to vector<8x128xf32>
    %69 = arith.addf %66, %68 : vector<8x128xf32>
    %70 = vector.extract_strided_slice %69 {offsets = [0, 0], sizes = [8, 96], strides = [1, 1]} : vector<8x128xf32> to vector<8x96xf32>
    %71 = arith.negf %70 : vector<8x96xf32>
    %72 = math.exp %71 : vector<8x96xf32>
    %cst_42 = arith.constant 1.000000e+00 : f32
    %73 = vector.broadcast %cst_42 : f32 to vector<8x96xf32>
    %74 = arith.addf %73, %72 : vector<8x96xf32>
    %75 = arith.divf %73, %74 : vector<8x96xf32>
    %76 = vector.extract_strided_slice %69 {offsets = [0, 96], sizes = [8, 32], strides = [1, 1]} : vector<8x128xf32> to vector<8x32xf32>
    %77 = math.tanh %76 : vector<8x32xf32>
    %78 = vector.extract_strided_slice %75 {offsets = [0, 0], sizes = [8, 32], strides = [1, 1]} : vector<8x96xf32> to vector<8x32xf32>
    %79 = vector.extract_strided_slice %75 {offsets = [0, 32], sizes = [8, 32], strides = [1, 1]} : vector<8x96xf32> to vector<8x32xf32>
    %80 = vector.extract_strided_slice %75 {offsets = [0, 64], sizes = [8, 32], strides = [1, 1]} : vector<8x96xf32> to vector<8x32xf32>
    %81 = arith.mulf %79, %37 : vector<8x32xf32>
    %82 = arith.mulf %78, %77 : vector<8x32xf32>
    %83 = arith.addf %81, %82 : vector<8x32xf32>
    %84 = math.tanh %83 : vector<8x32xf32>
    %85 = arith.mulf %80, %84 : vector<8x32xf32>
    %c0_43 = arith.constant 0 : index
    %c0_44 = arith.constant 0 : index
    %86 = vector.load %arg8[%c0_43, %c0_44] : memref<8x128xf32, #tpu.memory_space<vmem>>, vector<8x32xf32>
    tpu.vector_store %arg8[%c0_43, %c0_44], %85 {strides = array<i32>} : memref<8x128xf32, #tpu.memory_space<vmem>>, vector<8x32xf32>,
    %c0_45 = arith.constant 0 : index
    %c32_46 = arith.constant 32 : index
    %87 = vector.load %arg8[%c0_45, %c32_46] : memref<8x128xf32, #tpu.memory_space<vmem>>, vector<8x32xf32>
    tpu.vector_store %arg8[%c0_45, %c32_46], %65 {strides = array<i32>} : memref<8x128xf32, #tpu.memory_space<vmem>>, vector<8x32xf32>,
    %c0_47 = arith.constant 0 : index
    %c32_48 = arith.constant 32 : index
    %88 = vector.load %arg9[%c0_47, %c32_48] : memref<8x128xf32, #tpu.memory_space<vmem>>, vector<8x16xf32>
    %c0_49 = arith.constant 0 : index
    %c64_50 = arith.constant 64 : index
    %89 = vector.load %arg8[%c0_49, %c64_50] : memref<8x128xf32, #tpu.memory_space<vmem>>, vector<8x16xf32>
    tpu.vector_store %arg8[%c0_49, %c64_50], %88 {strides = array<i32>} : memref<8x128xf32, #tpu.memory_space<vmem>>, vector<8x16xf32>,
    %c0_51 = arith.constant 0 : index
    %c0_52 = arith.constant 0 : index
    %90 = vector.load %arg8[%c0_51, %c0_52] : memref<8x128xf32, #tpu.memory_space<vmem>>, vector<8x128xf32>
    %91 = arith.truncf %90 : vector<8x128xf32> to vector<8x128xbf16>
    %cst_53 = arith.constant dense<0.000000e+00> : vector<8x256xf32>
    %92 = tpu.matmul %91, %0, %cst_53 {dimension_numbers = #tpu.dot_dimension_numbers<[1], [0], [0], [1], [0, 0, 1, 1], [], []>} : vector<8x128xbf16>, vector<128x256xbf16>, vector<8x256xf32> -> vector<8x256xf32>
    %93 = vector.extract_strided_slice %92 {offsets = [0, 0], sizes = [8, 128], strides = [1, 1]} : vector<8x256xf32> to vector<8x128xf32>
    %94 = vector.broadcast %2 : vector<1x128xf32> to vector<8x128xf32>
    %95 = arith.addf %93, %94 : vector<8x128xf32>
    %96 = vector.extract_strided_slice %95 {offsets = [0, 0], sizes = [8, 96], strides = [1, 1]} : vector<8x128xf32> to vector<8x96xf32>
    %97 = arith.negf %96 : vector<8x96xf32>
    %98 = math.exp %97 : vector<8x96xf32>
    %cst_54 = arith.constant 1.000000e+00 : f32
    %99 = vector.broadcast %cst_54 : f32 to vector<8x96xf32>
    %100 = arith.addf %99, %98 : vector<8x96xf32>
    %101 = arith.divf %99, %100 : vector<8x96xf32>
    %102 = vector.extract_strided_slice %95 {offsets = [0, 96], sizes = [8, 32], strides = [1, 1]} : vector<8x128xf32> to vector<8x32xf32>
    %103 = math.tanh %102 : vector<8x32xf32>
    %104 = vector.extract_strided_slice %101 {offsets = [0, 0], sizes = [8, 32], strides = [1, 1]} : vector<8x96xf32> to vector<8x32xf32>
    %105 = vector.extract_strided_slice %101 {offsets = [0, 32], sizes = [8, 32], strides = [1, 1]} : vector<8x96xf32> to vector<8x32xf32>
    %106 = vector.extract_strided_slice %101 {offsets = [0, 64], sizes = [8, 32], strides = [1, 1]} : vector<8x96xf32> to vector<8x32xf32>
    %107 = arith.mulf %105, %63 : vector<8x32xf32>
    %108 = arith.mulf %104, %103 : vector<8x32xf32>
    %109 = arith.addf %107, %108 : vector<8x32xf32>
    %110 = math.tanh %109 : vector<8x32xf32>
    %111 = arith.mulf %106, %110 : vector<8x32xf32>
    %112 = vector.extract_strided_slice %92 {offsets = [0, 128], sizes = [8, 128], strides = [1, 1]} : vector<8x256xf32> to vector<8x128xf32>
    %c0_55 = arith.constant 0 : index
    %c32_56 = arith.constant 32 : index
    %113 = vector.load %arg10[%c0_55, %c32_56] : memref<8x256xf32, #tpu.memory_space<vmem>>, vector<8x32xf32>
    tpu.vector_store %arg10[%c0_55, %c32_56], %111 {strides = array<i32>} : memref<8x256xf32, #tpu.memory_space<vmem>>, vector<8x32xf32>,
    %114 = vector.broadcast %1 : vector<1x128xf32> to vector<8x128xf32>
    %115 = arith.addf %112, %114 : vector<8x128xf32>
    %116 = vector.extract_strided_slice %115 {offsets = [0, 0], sizes = [8, 96], strides = [1, 1]} : vector<8x128xf32> to vector<8x96xf32>
    %117 = arith.negf %116 : vector<8x96xf32>
    %118 = math.exp %117 : vector<8x96xf32>
    %cst_57 = arith.constant 1.000000e+00 : f32
    %119 = vector.broadcast %cst_57 : f32 to vector<8x96xf32>
    %120 = arith.addf %119, %118 : vector<8x96xf32>
    %121 = arith.divf %119, %120 : vector<8x96xf32>
    %122 = vector.extract_strided_slice %115 {offsets = [0, 96], sizes = [8, 32], strides = [1, 1]} : vector<8x128xf32> to vector<8x32xf32>
    %123 = math.tanh %122 : vector<8x32xf32>
    %124 = vector.extract_strided_slice %121 {offsets = [0, 0], sizes = [8, 32], strides = [1, 1]} : vector<8x96xf32> to vector<8x32xf32>
    %125 = vector.extract_strided_slice %121 {offsets = [0, 32], sizes = [8, 32], strides = [1, 1]} : vector<8x96xf32> to vector<8x32xf32>
    %126 = vector.extract_strided_slice %121 {offsets = [0, 64], sizes = [8, 32], strides = [1, 1]} : vector<8x96xf32> to vector<8x32xf32>
    %127 = arith.mulf %125, %83 : vector<8x32xf32>
    %128 = arith.mulf %124, %123 : vector<8x32xf32>
    %129 = arith.addf %127, %128 : vector<8x32xf32>
    %130 = math.tanh %129 : vector<8x32xf32>
    %131 = arith.mulf %126, %130 : vector<8x32xf32>
    %c0_58 = arith.constant 0 : index
    %c0_59 = arith.constant 0 : index
    %132 = vector.load %arg8[%c0_58, %c0_59] : memref<8x128xf32, #tpu.memory_space<vmem>>, vector<8x32xf32>
    tpu.vector_store %arg8[%c0_58, %c0_59], %131 {strides = array<i32>} : memref<8x128xf32, #tpu.memory_space<vmem>>, vector<8x32xf32>,
    %c0_60 = arith.constant 0 : index
    %c32_61 = arith.constant 32 : index
    %133 = vector.load %arg8[%c0_60, %c32_61] : memref<8x128xf32, #tpu.memory_space<vmem>>, vector<8x32xf32>
    tpu.vector_store %arg8[%c0_60, %c32_61], %111 {strides = array<i32>} : memref<8x128xf32, #tpu.memory_space<vmem>>, vector<8x32xf32>,
    %c0_62 = arith.constant 0 : index
    %c48 = arith.constant 48 : index
    %134 = vector.load %arg9[%c0_62, %c48] : memref<8x128xf32, #tpu.memory_space<vmem>>, vector<8x16xf32>
    %c0_63 = arith.constant 0 : index
    %c64_64 = arith.constant 64 : index
    %135 = vector.load %arg8[%c0_63, %c64_64] : memref<8x128xf32, #tpu.memory_space<vmem>>, vector<8x16xf32>
    tpu.vector_store %arg8[%c0_63, %c64_64], %134 {strides = array<i32>} : memref<8x128xf32, #tpu.memory_space<vmem>>, vector<8x16xf32>,
    %c0_65 = arith.constant 0 : index
    %c0_66 = arith.constant 0 : index
    %136 = vector.load %arg8[%c0_65, %c0_66] : memref<8x128xf32, #tpu.memory_space<vmem>>, vector<8x128xf32>
    %137 = arith.truncf %136 : vector<8x128xf32> to vector<8x128xbf16>
    %cst_67 = arith.constant dense<0.000000e+00> : vector<8x256xf32>
    %138 = tpu.matmul %137, %0, %cst_67 {dimension_numbers = #tpu.dot_dimension_numbers<[1], [0], [0], [1], [0, 0, 1, 1], [], []>} : vector<8x128xbf16>, vector<128x256xbf16>, vector<8x256xf32> -> vector<8x256xf32>
    %139 = vector.extract_strided_slice %138 {offsets = [0, 0], sizes = [8, 128], strides = [1, 1]} : vector<8x256xf32> to vector<8x128xf32>
    %140 = vector.broadcast %2 : vector<1x128xf32> to vector<8x128xf32>
    %141 = arith.addf %139, %140 : vector<8x128xf32>
    %142 = vector.extract_strided_slice %141 {offsets = [0, 0], sizes = [8, 96], strides = [1, 1]} : vector<8x128xf32> to vector<8x96xf32>
    %143 = arith.negf %142 : vector<8x96xf32>
    %144 = math.exp %143 : vector<8x96xf32>
    %cst_68 = arith.constant 1.000000e+00 : f32
    %145 = vector.broadcast %cst_68 : f32 to vector<8x96xf32>
    %146 = arith.addf %145, %144 : vector<8x96xf32>
    %147 = arith.divf %145, %146 : vector<8x96xf32>
    %148 = vector.extract_strided_slice %141 {offsets = [0, 96], sizes = [8, 32], strides = [1, 1]} : vector<8x128xf32> to vector<8x32xf32>
    %149 = math.tanh %148 : vector<8x32xf32>
    %150 = vector.extract_strided_slice %147 {offsets = [0, 0], sizes = [8, 32], strides = [1, 1]} : vector<8x96xf32> to vector<8x32xf32>
    %151 = vector.extract_strided_slice %147 {offsets = [0, 32], sizes = [8, 32], strides = [1, 1]} : vector<8x96xf32> to vector<8x32xf32>
    %152 = vector.extract_strided_slice %147 {offsets = [0, 64], sizes = [8, 32], strides = [1, 1]} : vector<8x96xf32> to vector<8x32xf32>
    %153 = arith.mulf %151, %109 : vector<8x32xf32>
    %154 = arith.mulf %150, %149 : vector<8x32xf32>
    %155 = arith.addf %153, %154 : vector<8x32xf32>
    %156 = math.tanh %155 : vector<8x32xf32>
    %157 = arith.mulf %152, %156 : vector<8x32xf32>
    %158 = vector.extract_strided_slice %138 {offsets = [0, 128], sizes = [8, 128], strides = [1, 1]} : vector<8x256xf32> to vector<8x128xf32>
    %c0_69 = arith.constant 0 : index
    %c64_70 = arith.constant 64 : index
    %159 = vector.load %arg10[%c0_69, %c64_70] : memref<8x256xf32, #tpu.memory_space<vmem>>, vector<8x32xf32>
    tpu.vector_store %arg10[%c0_69, %c64_70], %157 {strides = array<i32>} : memref<8x256xf32, #tpu.memory_space<vmem>>, vector<8x32xf32>,
    %160 = vector.broadcast %1 : vector<1x128xf32> to vector<8x128xf32>
    %161 = arith.addf %158, %160 : vector<8x128xf32>
    %162 = vector.extract_strided_slice %161 {offsets = [0, 0], sizes = [8, 96], strides = [1, 1]} : vector<8x128xf32> to vector<8x96xf32>
    %163 = arith.negf %162 : vector<8x96xf32>
    %164 = math.exp %163 : vector<8x96xf32>
    %cst_71 = arith.constant 1.000000e+00 : f32
    %165 = vector.broadcast %cst_71 : f32 to vector<8x96xf32>
    %166 = arith.addf %165, %164 : vector<8x96xf32>
    %167 = arith.divf %165, %166 : vector<8x96xf32>
    %168 = vector.extract_strided_slice %161 {offsets = [0, 96], sizes = [8, 32], strides = [1, 1]} : vector<8x128xf32> to vector<8x32xf32>
    %169 = math.tanh %168 : vector<8x32xf32>
    %170 = vector.extract_strided_slice %167 {offsets = [0, 0], sizes = [8, 32], strides = [1, 1]} : vector<8x96xf32> to vector<8x32xf32>
    %171 = vector.extract_strided_slice %167 {offsets = [0, 32], sizes = [8, 32], strides = [1, 1]} : vector<8x96xf32> to vector<8x32xf32>
    %172 = vector.extract_strided_slice %167 {offsets = [0, 64], sizes = [8, 32], strides = [1, 1]} : vector<8x96xf32> to vector<8x32xf32>
    %173 = arith.mulf %171, %129 : vector<8x32xf32>
    %174 = arith.mulf %170, %169 : vector<8x32xf32>
    %175 = arith.addf %173, %174 : vector<8x32xf32>
    %176 = math.tanh %175 : vector<8x32xf32>
    %177 = arith.mulf %172, %176 : vector<8x32xf32>
    %c0_72 = arith.constant 0 : index
    %c0_73 = arith.constant 0 : index
    %178 = vector.load %arg8[%c0_72, %c0_73] : memref<8x128xf32, #tpu.memory_space<vmem>>, vector<8x32xf32>
    tpu.vector_store %arg8[%c0_72, %c0_73], %177 {strides = array<i32>} : memref<8x128xf32, #tpu.memory_space<vmem>>, vector<8x32xf32>,
    %c0_74 = arith.constant 0 : index
    %c32_75 = arith.constant 32 : index
    %179 = vector.load %arg8[%c0_74, %c32_75] : memref<8x128xf32, #tpu.memory_space<vmem>>, vector<8x32xf32>
    tpu.vector_store %arg8[%c0_74, %c32_75], %157 {strides = array<i32>} : memref<8x128xf32, #tpu.memory_space<vmem>>, vector<8x32xf32>,
    %c0_76 = arith.constant 0 : index
    %c64_77 = arith.constant 64 : index
    %180 = vector.load %arg9[%c0_76, %c64_77] : memref<8x128xf32, #tpu.memory_space<vmem>>, vector<8x16xf32>
    %c0_78 = arith.constant 0 : index
    %c64_79 = arith.constant 64 : index
    %181 = vector.load %arg8[%c0_78, %c64_79] : memref<8x128xf32, #tpu.memory_space<vmem>>, vector<8x16xf32>
    tpu.vector_store %arg8[%c0_78, %c64_79], %180 {strides = array<i32>} : memref<8x128xf32, #tpu.memory_space<vmem>>, vector<8x16xf32>,
    %c0_80 = arith.constant 0 : index
    %c0_81 = arith.constant 0 : index
    %182 = vector.load %arg8[%c0_80, %c0_81] : memref<8x128xf32, #tpu.memory_space<vmem>>, vector<8x128xf32>
    %183 = arith.truncf %182 : vector<8x128xf32> to vector<8x128xbf16>
    %cst_82 = arith.constant dense<0.000000e+00> : vector<8x256xf32>
    %184 = tpu.matmul %183, %0, %cst_82 {dimension_numbers = #tpu.dot_dimension_numbers<[1], [0], [0], [1], [0, 0, 1, 1], [], []>} : vector<8x128xbf16>, vector<128x256xbf16>, vector<8x256xf32> -> vector<8x256xf32>
    %185 = vector.extract_strided_slice %184 {offsets = [0, 0], sizes = [8, 128], strides = [1, 1]} : vector<8x256xf32> to vector<8x128xf32>
    %186 = vector.broadcast %2 : vector<1x128xf32> to vector<8x128xf32>
    %187 = arith.addf %185, %186 : vector<8x128xf32>
    %188 = vector.extract_strided_slice %187 {offsets = [0, 0], sizes = [8, 96], strides = [1, 1]} : vector<8x128xf32> to vector<8x96xf32>
    %189 = arith.negf %188 : vector<8x96xf32>
    %190 = math.exp %189 : vector<8x96xf32>
    %cst_83 = arith.constant 1.000000e+00 : f32
    %191 = vector.broadcast %cst_83 : f32 to vector<8x96xf32>
    %192 = arith.addf %191, %190 : vector<8x96xf32>
    %193 = arith.divf %191, %192 : vector<8x96xf32>
    %194 = vector.extract_strided_slice %187 {offsets = [0, 96], sizes = [8, 32], strides = [1, 1]} : vector<8x128xf32> to vector<8x32xf32>
    %195 = math.tanh %194 : vector<8x32xf32>
    %196 = vector.extract_strided_slice %193 {offsets = [0, 0], sizes = [8, 32], strides = [1, 1]} : vector<8x96xf32> to vector<8x32xf32>
    %197 = vector.extract_strided_slice %193 {offsets = [0, 32], sizes = [8, 32], strides = [1, 1]} : vector<8x96xf32> to vector<8x32xf32>
    %198 = vector.extract_strided_slice %193 {offsets = [0, 64], sizes = [8, 32], strides = [1, 1]} : vector<8x96xf32> to vector<8x32xf32>
    %199 = arith.mulf %197, %155 : vector<8x32xf32>
    %200 = arith.mulf %196, %195 : vector<8x32xf32>
    %201 = arith.addf %199, %200 : vector<8x32xf32>
    %202 = math.tanh %201 : vector<8x32xf32>
    %203 = arith.mulf %198, %202 : vector<8x32xf32>
    %204 = vector.extract_strided_slice %184 {offsets = [0, 128], sizes = [8, 128], strides = [1, 1]} : vector<8x256xf32> to vector<8x128xf32>
    %c0_84 = arith.constant 0 : index
    %c96 = arith.constant 96 : index
    %205 = vector.load %arg10[%c0_84, %c96] : memref<8x256xf32, #tpu.memory_space<vmem>>, vector<8x32xf32>
    tpu.vector_store %arg10[%c0_84, %c96], %203 {strides = array<i32>} : memref<8x256xf32, #tpu.memory_space<vmem>>, vector<8x32xf32>,
    %206 = vector.broadcast %1 : vector<1x128xf32> to vector<8x128xf32>
    %207 = arith.addf %204, %206 : vector<8x128xf32>
    %208 = vector.extract_strided_slice %207 {offsets = [0, 0], sizes = [8, 96], strides = [1, 1]} : vector<8x128xf32> to vector<8x96xf32>
    %209 = arith.negf %208 : vector<8x96xf32>
    %210 = math.exp %209 : vector<8x96xf32>
    %cst_85 = arith.constant 1.000000e+00 : f32
    %211 = vector.broadcast %cst_85 : f32 to vector<8x96xf32>
    %212 = arith.addf %211, %210 : vector<8x96xf32>
    %213 = arith.divf %211, %212 : vector<8x96xf32>
    %214 = vector.extract_strided_slice %207 {offsets = [0, 96], sizes = [8, 32], strides = [1, 1]} : vector<8x128xf32> to vector<8x32xf32>
    %215 = math.tanh %214 : vector<8x32xf32>
    %216 = vector.extract_strided_slice %213 {offsets = [0, 0], sizes = [8, 32], strides = [1, 1]} : vector<8x96xf32> to vector<8x32xf32>
    %217 = vector.extract_strided_slice %213 {offsets = [0, 32], sizes = [8, 32], strides = [1, 1]} : vector<8x96xf32> to vector<8x32xf32>
    %218 = vector.extract_strided_slice %213 {offsets = [0, 64], sizes = [8, 32], strides = [1, 1]} : vector<8x96xf32> to vector<8x32xf32>
    %219 = arith.mulf %217, %175 : vector<8x32xf32>
    %220 = arith.mulf %216, %215 : vector<8x32xf32>
    %221 = arith.addf %219, %220 : vector<8x32xf32>
    %222 = math.tanh %221 : vector<8x32xf32>
    %223 = arith.mulf %218, %222 : vector<8x32xf32>
    %c0_86 = arith.constant 0 : index
    %c0_87 = arith.constant 0 : index
    %224 = vector.load %arg8[%c0_86, %c0_87] : memref<8x128xf32, #tpu.memory_space<vmem>>, vector<8x32xf32>
    tpu.vector_store %arg8[%c0_86, %c0_87], %223 {strides = array<i32>} : memref<8x128xf32, #tpu.memory_space<vmem>>, vector<8x32xf32>,
    %c0_88 = arith.constant 0 : index
    %c32_89 = arith.constant 32 : index
    %225 = vector.load %arg8[%c0_88, %c32_89] : memref<8x128xf32, #tpu.memory_space<vmem>>, vector<8x32xf32>
    tpu.vector_store %arg8[%c0_88, %c32_89], %203 {strides = array<i32>} : memref<8x128xf32, #tpu.memory_space<vmem>>, vector<8x32xf32>,
    %c0_90 = arith.constant 0 : index
    %c80 = arith.constant 80 : index
    %226 = vector.load %arg9[%c0_90, %c80] : memref<8x128xf32, #tpu.memory_space<vmem>>, vector<8x16xf32>
    %c0_91 = arith.constant 0 : index
    %c64_92 = arith.constant 64 : index
    %227 = vector.load %arg8[%c0_91, %c64_92] : memref<8x128xf32, #tpu.memory_space<vmem>>, vector<8x16xf32>
    tpu.vector_store %arg8[%c0_91, %c64_92], %226 {strides = array<i32>} : memref<8x128xf32, #tpu.memory_space<vmem>>, vector<8x16xf32>,
    %c0_93 = arith.constant 0 : index
    %c0_94 = arith.constant 0 : index
    %228 = vector.load %arg8[%c0_93, %c0_94] : memref<8x128xf32, #tpu.memory_space<vmem>>, vector<8x128xf32>
    %229 = arith.truncf %228 : vector<8x128xf32> to vector<8x128xbf16>
    %cst_95 = arith.constant dense<0.000000e+00> : vector<8x256xf32>
    %230 = tpu.matmul %229, %0, %cst_95 {dimension_numbers = #tpu.dot_dimension_numbers<[1], [0], [0], [1], [0, 0, 1, 1], [], []>} : vector<8x128xbf16>, vector<128x256xbf16>, vector<8x256xf32> -> vector<8x256xf32>
    %231 = vector.extract_strided_slice %230 {offsets = [0, 0], sizes = [8, 128], strides = [1, 1]} : vector<8x256xf32> to vector<8x128xf32>
    %232 = vector.broadcast %2 : vector<1x128xf32> to vector<8x128xf32>
    %233 = arith.addf %231, %232 : vector<8x128xf32>
    %234 = vector.extract_strided_slice %233 {offsets = [0, 0], sizes = [8, 96], strides = [1, 1]} : vector<8x128xf32> to vector<8x96xf32>
    %235 = arith.negf %234 : vector<8x96xf32>
    %236 = math.exp %235 : vector<8x96xf32>
    %cst_96 = arith.constant 1.000000e+00 : f32
    %237 = vector.broadcast %cst_96 : f32 to vector<8x96xf32>
    %238 = arith.addf %237, %236 : vector<8x96xf32>
    %239 = arith.divf %237, %238 : vector<8x96xf32>
    %240 = vector.extract_strided_slice %233 {offsets = [0, 96], sizes = [8, 32], strides = [1, 1]} : vector<8x128xf32> to vector<8x32xf32>
    %241 = math.tanh %240 : vector<8x32xf32>
    %242 = vector.extract_strided_slice %239 {offsets = [0, 0], sizes = [8, 32], strides = [1, 1]} : vector<8x96xf32> to vector<8x32xf32>
    %243 = vector.extract_strided_slice %239 {offsets = [0, 32], sizes = [8, 32], strides = [1, 1]} : vector<8x96xf32> to vector<8x32xf32>
    %244 = vector.extract_strided_slice %239 {offsets = [0, 64], sizes = [8, 32], strides = [1, 1]} : vector<8x96xf32> to vector<8x32xf32>
    %245 = arith.mulf %243, %201 : vector<8x32xf32>
    %246 = arith.mulf %242, %241 : vector<8x32xf32>
    %247 = arith.addf %245, %246 : vector<8x32xf32>
    %248 = math.tanh %247 : vector<8x32xf32>
    %249 = arith.mulf %244, %248 : vector<8x32xf32>
    %250 = vector.extract_strided_slice %230 {offsets = [0, 128], sizes = [8, 128], strides = [1, 1]} : vector<8x256xf32> to vector<8x128xf32>
    %c0_97 = arith.constant 0 : index
    %c128 = arith.constant 128 : index
    %251 = vector.load %arg10[%c0_97, %c128] : memref<8x256xf32, #tpu.memory_space<vmem>>, vector<8x32xf32>
    tpu.vector_store %arg10[%c0_97, %c128], %249 {strides = array<i32>} : memref<8x256xf32, #tpu.memory_space<vmem>>, vector<8x32xf32>,
    %252 = vector.broadcast %1 : vector<1x128xf32> to vector<8x128xf32>
    %253 = arith.addf %250, %252 : vector<8x128xf32>
    %254 = vector.extract_strided_slice %253 {offsets = [0, 0], sizes = [8, 96], strides = [1, 1]} : vector<8x128xf32> to vector<8x96xf32>
    %255 = arith.negf %254 : vector<8x96xf32>
    %256 = math.exp %255 : vector<8x96xf32>
    %cst_98 = arith.constant 1.000000e+00 : f32
    %257 = vector.broadcast %cst_98 : f32 to vector<8x96xf32>
    %258 = arith.addf %257, %256 : vector<8x96xf32>
    %259 = arith.divf %257, %258 : vector<8x96xf32>
    %260 = vector.extract_strided_slice %253 {offsets = [0, 96], sizes = [8, 32], strides = [1, 1]} : vector<8x128xf32> to vector<8x32xf32>
    %261 = math.tanh %260 : vector<8x32xf32>
    %262 = vector.extract_strided_slice %259 {offsets = [0, 0], sizes = [8, 32], strides = [1, 1]} : vector<8x96xf32> to vector<8x32xf32>
    %263 = vector.extract_strided_slice %259 {offsets = [0, 32], sizes = [8, 32], strides = [1, 1]} : vector<8x96xf32> to vector<8x32xf32>
    %264 = vector.extract_strided_slice %259 {offsets = [0, 64], sizes = [8, 32], strides = [1, 1]} : vector<8x96xf32> to vector<8x32xf32>
    %265 = arith.mulf %263, %221 : vector<8x32xf32>
    %266 = arith.mulf %262, %261 : vector<8x32xf32>
    %267 = arith.addf %265, %266 : vector<8x32xf32>
    %268 = math.tanh %267 : vector<8x32xf32>
    %269 = arith.mulf %264, %268 : vector<8x32xf32>
    %c0_99 = arith.constant 0 : index
    %c0_100 = arith.constant 0 : index
    %270 = vector.load %arg8[%c0_99, %c0_100] : memref<8x128xf32, #tpu.memory_space<vmem>>, vector<8x32xf32>
    tpu.vector_store %arg8[%c0_99, %c0_100], %269 {strides = array<i32>} : memref<8x128xf32, #tpu.memory_space<vmem>>, vector<8x32xf32>,
    %c0_101 = arith.constant 0 : index
    %c32_102 = arith.constant 32 : index
    %271 = vector.load %arg8[%c0_101, %c32_102] : memref<8x128xf32, #tpu.memory_space<vmem>>, vector<8x32xf32>
    tpu.vector_store %arg8[%c0_101, %c32_102], %249 {strides = array<i32>} : memref<8x128xf32, #tpu.memory_space<vmem>>, vector<8x32xf32>,
    %c0_103 = arith.constant 0 : index
    %c96_104 = arith.constant 96 : index
    %272 = vector.load %arg9[%c0_103, %c96_104] : memref<8x128xf32, #tpu.memory_space<vmem>>, vector<8x16xf32>
    %c0_105 = arith.constant 0 : index
    %c64_106 = arith.constant 64 : index
    %273 = vector.load %arg8[%c0_105, %c64_106] : memref<8x128xf32, #tpu.memory_space<vmem>>, vector<8x16xf32>
    tpu.vector_store %arg8[%c0_105, %c64_106], %272 {strides = array<i32>} : memref<8x128xf32, #tpu.memory_space<vmem>>, vector<8x16xf32>,
    %c0_107 = arith.constant 0 : index
    %c0_108 = arith.constant 0 : index
    %274 = vector.load %arg8[%c0_107, %c0_108] : memref<8x128xf32, #tpu.memory_space<vmem>>, vector<8x128xf32>
    %275 = arith.truncf %274 : vector<8x128xf32> to vector<8x128xbf16>
    %cst_109 = arith.constant dense<0.000000e+00> : vector<8x256xf32>
    %276 = tpu.matmul %275, %0, %cst_109 {dimension_numbers = #tpu.dot_dimension_numbers<[1], [0], [0], [1], [0, 0, 1, 1], [], []>} : vector<8x128xbf16>, vector<128x256xbf16>, vector<8x256xf32> -> vector<8x256xf32>
    %277 = vector.extract_strided_slice %276 {offsets = [0, 0], sizes = [8, 128], strides = [1, 1]} : vector<8x256xf32> to vector<8x128xf32>
    %278 = vector.broadcast %2 : vector<1x128xf32> to vector<8x128xf32>
    %279 = arith.addf %277, %278 : vector<8x128xf32>
    %280 = vector.extract_strided_slice %279 {offsets = [0, 0], sizes = [8, 96], strides = [1, 1]} : vector<8x128xf32> to vector<8x96xf32>
    %281 = arith.negf %280 : vector<8x96xf32>
    %282 = math.exp %281 : vector<8x96xf32>
    %cst_110 = arith.constant 1.000000e+00 : f32
    %283 = vector.broadcast %cst_110 : f32 to vector<8x96xf32>
    %284 = arith.addf %283, %282 : vector<8x96xf32>
    %285 = arith.divf %283, %284 : vector<8x96xf32>
    %286 = vector.extract_strided_slice %279 {offsets = [0, 96], sizes = [8, 32], strides = [1, 1]} : vector<8x128xf32> to vector<8x32xf32>
    %287 = math.tanh %286 : vector<8x32xf32>
    %288 = vector.extract_strided_slice %285 {offsets = [0, 0], sizes = [8, 32], strides = [1, 1]} : vector<8x96xf32> to vector<8x32xf32>
    %289 = vector.extract_strided_slice %285 {offsets = [0, 32], sizes = [8, 32], strides = [1, 1]} : vector<8x96xf32> to vector<8x32xf32>
    %290 = vector.extract_strided_slice %285 {offsets = [0, 64], sizes = [8, 32], strides = [1, 1]} : vector<8x96xf32> to vector<8x32xf32>
    %291 = arith.mulf %289, %247 : vector<8x32xf32>
    %292 = arith.mulf %288, %287 : vector<8x32xf32>
    %293 = arith.addf %291, %292 : vector<8x32xf32>
    %294 = math.tanh %293 : vector<8x32xf32>
    %295 = arith.mulf %290, %294 : vector<8x32xf32>
    %296 = vector.extract_strided_slice %276 {offsets = [0, 128], sizes = [8, 128], strides = [1, 1]} : vector<8x256xf32> to vector<8x128xf32>
    %c0_111 = arith.constant 0 : index
    %c160 = arith.constant 160 : index
    %297 = vector.load %arg10[%c0_111, %c160] : memref<8x256xf32, #tpu.memory_space<vmem>>, vector<8x32xf32>
    tpu.vector_store %arg10[%c0_111, %c160], %295 {strides = array<i32>} : memref<8x256xf32, #tpu.memory_space<vmem>>, vector<8x32xf32>,
    %298 = vector.broadcast %1 : vector<1x128xf32> to vector<8x128xf32>
    %299 = arith.addf %296, %298 : vector<8x128xf32>
    %300 = vector.extract_strided_slice %299 {offsets = [0, 0], sizes = [8, 96], strides = [1, 1]} : vector<8x128xf32> to vector<8x96xf32>
    %301 = arith.negf %300 : vector<8x96xf32>
    %302 = math.exp %301 : vector<8x96xf32>
    %cst_112 = arith.constant 1.000000e+00 : f32
    %303 = vector.broadcast %cst_112 : f32 to vector<8x96xf32>
    %304 = arith.addf %303, %302 : vector<8x96xf32>
    %305 = arith.divf %303, %304 : vector<8x96xf32>
    %306 = vector.extract_strided_slice %299 {offsets = [0, 96], sizes = [8, 32], strides = [1, 1]} : vector<8x128xf32> to vector<8x32xf32>
    %307 = math.tanh %306 : vector<8x32xf32>
    %308 = vector.extract_strided_slice %305 {offsets = [0, 0], sizes = [8, 32], strides = [1, 1]} : vector<8x96xf32> to vector<8x32xf32>
    %309 = vector.extract_strided_slice %305 {offsets = [0, 32], sizes = [8, 32], strides = [1, 1]} : vector<8x96xf32> to vector<8x32xf32>
    %310 = vector.extract_strided_slice %305 {offsets = [0, 64], sizes = [8, 32], strides = [1, 1]} : vector<8x96xf32> to vector<8x32xf32>
    %311 = arith.mulf %309, %267 : vector<8x32xf32>
    %312 = arith.mulf %308, %307 : vector<8x32xf32>
    %313 = arith.addf %311, %312 : vector<8x32xf32>
    %314 = math.tanh %313 : vector<8x32xf32>
    %315 = arith.mulf %310, %314 : vector<8x32xf32>
    %c0_113 = arith.constant 0 : index
    %c0_114 = arith.constant 0 : index
    %316 = vector.load %arg8[%c0_113, %c0_114] : memref<8x128xf32, #tpu.memory_space<vmem>>, vector<8x32xf32>
    tpu.vector_store %arg8[%c0_113, %c0_114], %315 {strides = array<i32>} : memref<8x128xf32, #tpu.memory_space<vmem>>, vector<8x32xf32>,
    %c0_115 = arith.constant 0 : index
    %c32_116 = arith.constant 32 : index
    %317 = vector.load %arg8[%c0_115, %c32_116] : memref<8x128xf32, #tpu.memory_space<vmem>>, vector<8x32xf32>
    tpu.vector_store %arg8[%c0_115, %c32_116], %295 {strides = array<i32>} : memref<8x128xf32, #tpu.memory_space<vmem>>, vector<8x32xf32>,
    %c0_117 = arith.constant 0 : index
    %c112 = arith.constant 112 : index
    %318 = vector.load %arg9[%c0_117, %c112] : memref<8x128xf32, #tpu.memory_space<vmem>>, vector<8x16xf32>
    %c0_118 = arith.constant 0 : index
    %c64_119 = arith.constant 64 : index
    %319 = vector.load %arg8[%c0_118, %c64_119] : memref<8x128xf32, #tpu.memory_space<vmem>>, vector<8x16xf32>
    tpu.vector_store %arg8[%c0_118, %c64_119], %318 {strides = array<i32>} : memref<8x128xf32, #tpu.memory_space<vmem>>, vector<8x16xf32>,
    %c0_120 = arith.constant 0 : index
    %c0_121 = arith.constant 0 : index
    %320 = vector.load %arg8[%c0_120, %c0_121] : memref<8x128xf32, #tpu.memory_space<vmem>>, vector<8x128xf32>
    %321 = arith.truncf %320 : vector<8x128xf32> to vector<8x128xbf16>
    %cst_122 = arith.constant dense<0.000000e+00> : vector<8x256xf32>
    %322 = tpu.matmul %321, %0, %cst_122 {dimension_numbers = #tpu.dot_dimension_numbers<[1], [0], [0], [1], [0, 0, 1, 1], [], []>} : vector<8x128xbf16>, vector<128x256xbf16>, vector<8x256xf32> -> vector<8x256xf32>
    %323 = vector.extract_strided_slice %322 {offsets = [0, 0], sizes = [8, 128], strides = [1, 1]} : vector<8x256xf32> to vector<8x128xf32>
    %324 = vector.broadcast %2 : vector<1x128xf32> to vector<8x128xf32>
    %325 = arith.addf %323, %324 : vector<8x128xf32>
    %326 = vector.extract_strided_slice %325 {offsets = [0, 0], sizes = [8, 96], strides = [1, 1]} : vector<8x128xf32> to vector<8x96xf32>
    %327 = arith.negf %326 : vector<8x96xf32>
    %328 = math.exp %327 : vector<8x96xf32>
    %cst_123 = arith.constant 1.000000e+00 : f32
    %329 = vector.broadcast %cst_123 : f32 to vector<8x96xf32>
    %330 = arith.addf %329, %328 : vector<8x96xf32>
    %331 = arith.divf %329, %330 : vector<8x96xf32>
    %332 = vector.extract_strided_slice %325 {offsets = [0, 96], sizes = [8, 32], strides = [1, 1]} : vector<8x128xf32> to vector<8x32xf32>
    %333 = math.tanh %332 : vector<8x32xf32>
    %334 = vector.extract_strided_slice %331 {offsets = [0, 0], sizes = [8, 32], strides = [1, 1]} : vector<8x96xf32> to vector<8x32xf32>
    %335 = vector.extract_strided_slice %331 {offsets = [0, 32], sizes = [8, 32], strides = [1, 1]} : vector<8x96xf32> to vector<8x32xf32>
    %336 = vector.extract_strided_slice %331 {offsets = [0, 64], sizes = [8, 32], strides = [1, 1]} : vector<8x96xf32> to vector<8x32xf32>
    %337 = arith.mulf %335, %293 : vector<8x32xf32>
    %338 = arith.mulf %334, %333 : vector<8x32xf32>
    %339 = arith.addf %337, %338 : vector<8x32xf32>
    %340 = math.tanh %339 : vector<8x32xf32>
    %341 = arith.mulf %336, %340 : vector<8x32xf32>
    %342 = vector.extract_strided_slice %322 {offsets = [0, 128], sizes = [8, 128], strides = [1, 1]} : vector<8x256xf32> to vector<8x128xf32>
    %c0_124 = arith.constant 0 : index
    %c192 = arith.constant 192 : index
    %343 = vector.load %arg10[%c0_124, %c192] : memref<8x256xf32, #tpu.memory_space<vmem>>, vector<8x32xf32>
    tpu.vector_store %arg10[%c0_124, %c192], %341 {strides = array<i32>} : memref<8x256xf32, #tpu.memory_space<vmem>>, vector<8x32xf32>,
    %344 = vector.broadcast %1 : vector<1x128xf32> to vector<8x128xf32>
    %345 = arith.addf %342, %344 : vector<8x128xf32>
    %346 = vector.extract_strided_slice %345 {offsets = [0, 0], sizes = [8, 96], strides = [1, 1]} : vector<8x128xf32> to vector<8x96xf32>
    %347 = arith.negf %346 : vector<8x96xf32>
    %348 = math.exp %347 : vector<8x96xf32>
    %cst_125 = arith.constant 1.000000e+00 : f32
    %349 = vector.broadcast %cst_125 : f32 to vector<8x96xf32>
    %350 = arith.addf %349, %348 : vector<8x96xf32>
    %351 = arith.divf %349, %350 : vector<8x96xf32>
    %352 = vector.extract_strided_slice %345 {offsets = [0, 96], sizes = [8, 32], strides = [1, 1]} : vector<8x128xf32> to vector<8x32xf32>
    %353 = math.tanh %352 : vector<8x32xf32>
    %354 = vector.extract_strided_slice %351 {offsets = [0, 0], sizes = [8, 32], strides = [1, 1]} : vector<8x96xf32> to vector<8x32xf32>
    %355 = vector.extract_strided_slice %351 {offsets = [0, 32], sizes = [8, 32], strides = [1, 1]} : vector<8x96xf32> to vector<8x32xf32>
    %356 = vector.extract_strided_slice %351 {offsets = [0, 64], sizes = [8, 32], strides = [1, 1]} : vector<8x96xf32> to vector<8x32xf32>
    %357 = arith.mulf %355, %313 : vector<8x32xf32>
    %358 = arith.mulf %354, %353 : vector<8x32xf32>
    %359 = arith.addf %357, %358 : vector<8x32xf32>
    %360 = math.tanh %359 : vector<8x32xf32>
    %361 = arith.mulf %356, %360 : vector<8x32xf32>
    %c0_126 = arith.constant 0 : index
    %c0_127 = arith.constant 0 : index
    %362 = vector.load %arg8[%c0_126, %c0_127] : memref<8x128xf32, #tpu.memory_space<vmem>>, vector<8x32xf32>
    tpu.vector_store %arg8[%c0_126, %c0_127], %361 {strides = array<i32>} : memref<8x128xf32, #tpu.memory_space<vmem>>, vector<8x32xf32>,
    %c0_128 = arith.constant 0 : index
    %c32_129 = arith.constant 32 : index
    %363 = vector.load %arg8[%c0_128, %c32_129] : memref<8x128xf32, #tpu.memory_space<vmem>>, vector<8x32xf32>
    tpu.vector_store %arg8[%c0_128, %c32_129], %341 {strides = array<i32>} : memref<8x128xf32, #tpu.memory_space<vmem>>, vector<8x32xf32>,
    %c0_130 = arith.constant 0 : index
    %c0_131 = arith.constant 0 : index
    %364 = vector.load %arg8[%c0_130, %c0_131] : memref<8x128xf32, #tpu.memory_space<vmem>>, vector<8x128xf32>
    %365 = arith.truncf %364 : vector<8x128xf32> to vector<8x128xbf16>
    %cst_132 = arith.constant dense<0.000000e+00> : vector<8x256xf32>
    %366 = tpu.matmul %365, %0, %cst_132 {dimension_numbers = #tpu.dot_dimension_numbers<[1], [0], [0], [1], [0, 0, 1, 1], [], []>} : vector<8x128xbf16>, vector<128x256xbf16>, vector<8x256xf32> -> vector<8x256xf32>
    %367 = vector.extract_strided_slice %366 {offsets = [0, 0], sizes = [8, 128], strides = [1, 1]} : vector<8x256xf32> to vector<8x128xf32>
    %368 = vector.broadcast %2 : vector<1x128xf32> to vector<8x128xf32>
    %369 = arith.addf %367, %368 : vector<8x128xf32>
    %370 = vector.extract_strided_slice %369 {offsets = [0, 0], sizes = [8, 96], strides = [1, 1]} : vector<8x128xf32> to vector<8x96xf32>
    %371 = arith.negf %370 : vector<8x96xf32>
    %372 = math.exp %371 : vector<8x96xf32>
    %cst_133 = arith.constant 1.000000e+00 : f32
    %373 = vector.broadcast %cst_133 : f32 to vector<8x96xf32>
    %374 = arith.addf %373, %372 : vector<8x96xf32>
    %375 = arith.divf %373, %374 : vector<8x96xf32>
    %376 = vector.extract_strided_slice %369 {offsets = [0, 96], sizes = [8, 32], strides = [1, 1]} : vector<8x128xf32> to vector<8x32xf32>
    %377 = math.tanh %376 : vector<8x32xf32>
    %378 = vector.extract_strided_slice %375 {offsets = [0, 0], sizes = [8, 32], strides = [1, 1]} : vector<8x96xf32> to vector<8x32xf32>
    %379 = vector.extract_strided_slice %375 {offsets = [0, 32], sizes = [8, 32], strides = [1, 1]} : vector<8x96xf32> to vector<8x32xf32>
    %380 = vector.extract_strided_slice %375 {offsets = [0, 64], sizes = [8, 32], strides = [1, 1]} : vector<8x96xf32> to vector<8x32xf32>
    %381 = arith.mulf %379, %339 : vector<8x32xf32>
    %382 = arith.mulf %378, %377 : vector<8x32xf32>
    %383 = arith.addf %381, %382 : vector<8x32xf32>
    %384 = math.tanh %383 : vector<8x32xf32>
    %385 = arith.mulf %380, %384 : vector<8x32xf32>
    %c0_134 = arith.constant 0 : index
    %c224 = arith.constant 224 : index
    %386 = vector.load %arg10[%c0_134, %c224] : memref<8x256xf32, #tpu.memory_space<vmem>>, vector<8x32xf32>
    tpu.vector_store %arg10[%c0_134, %c224], %385 {strides = array<i32>} : memref<8x256xf32, #tpu.memory_space<vmem>>, vector<8x32xf32>,
    %c0_135 = arith.constant 0 : index
    %c0_136 = arith.constant 0 : index
    %387 = vector.load %arg10[%c0_135, %c0_136] : memref<8x256xf32, #tpu.memory_space<vmem>>, vector<8x256xf32>
    %388 = arith.truncf %387 : vector<8x256xf32> to vector<8x256xbf16>
    %c0_137 = arith.constant 0 : index
    %c0_138 = arith.constant 0 : index
    %389 = vector.load %arg5[%c0_137, %c0_138] : memref<256x128xbf16, #tpu.memory_space<vmem>>, vector<256x128xbf16>
    %cst_139 = arith.constant dense<0.000000e+00> : vector<8x128xf32>
    %390 = tpu.matmul %388, %389, %cst_139 {dimension_numbers = #tpu.dot_dimension_numbers<[1], [0], [0], [1], [0, 0, 1, 1], [], []>} : vector<8x256xbf16>, vector<256x128xbf16>, vector<8x128xf32> -> vector<8x128xf32>
    %c0_140 = arith.constant 0 : index
    %c0_141 = arith.constant 0 : index
    %391 = vector.load %arg6[%c0_140, %c0_141] : memref<1x128xf32, #tpu.memory_space<vmem>>, vector<1x128xf32>
    %392 = vector.broadcast %391 : vector<1x128xf32> to vector<8x128xf32>
    %393 = arith.addf %390, %392 : vector<8x128xf32>
    %c0_142 = arith.constant 0 : index
    %c0_143 = arith.constant 0 : index
    %394 = vector.load %arg7[%c0_142, %c0_143] : memref<8x128xf32, #tpu.memory_space<vmem>>, vector<8x128xf32>
    tpu.vector_store %arg7[%c0_142, %c0_143], %393 {strides = array<i32>} : memref<8x128xf32, #tpu.memory_space<vmem>>, vector<8x128xf32>,
    return
  }
}

</mosaic_0001>

<bundles_post_ra>
// kernel: siamese_forward.1
= control target key start
LH: loop header
LB: loop body
LE: loop exit
PB: predicated region body
PF: predicated region fallthrough
CT: control target
= control target key end

     0   :  { %12 = vsyncpa [#allocation6], 0  ;;  %s2078_s0 = inlined_call_operand.vmem [shape: f32[2,128], index: 0, kind: input, shape index: {}]   ;;  %s2079_s1 = inlined_call_operand.vmem [shape: f32[2,128], index: 1, kind: input, shape index: {}]   ;;  %s2080_s2 = inlined_call_operand.hbm [shape: bf16[128,256], index: 2, kind: input, shape index: {}]   ;;  %s2081_s3 = inlined_call_operand.vmem [shape: f32[1,128], index: 3, kind: input, shape index: {}]   ;;  %s2082_s4 = inlined_call_operand.vmem [shape: f32[1,128], index: 4, kind: input, shape index: {}]   ;;  %s2083_s5 = inlined_call_operand.hbm [shape: bf16[256,128], index: 5, kind: input, shape index: {}]   ;;  %s2084_s6 = inlined_call_operand.vmem [shape: f32[1,128], index: 6, kind: input, shape index: {}]   ;;  %s2085_s7 = inlined_call_operand.vmem [shape: f32[8,128], index: 7, kind: output, shape index: {}]  }
   0x1   :  { %13 = vsyncpa [#allocation8], 0  ;;  %s1600_s24 = smov [#allocation5]   ;;  %s1552_s28 = scalar_lea.hbm %s2080_s2, 2048 }
   0x2   :  { %s23_s25 = sshll.u32 %s1600_s24, 4  ;;  %p1553_p0 = scmp.ne.s32.totalorder %s2080_s2, %s1552_s28  ;;  %s24_s25 = int_to_ptr.vmem [resolvable:$true] %s23_s25 }
   0x3   :  { %p1556_p1 = scmp.lt.u32.totalorder %s1552_s28, %s2080_s2 }
   0x5   :  { %p1558_p2 = pnand %p1556_p1, %p1553_p0 }
   0x7   :  { %1561 = shalt.err (!%p1558_p2)
}
   0x8   :  { %s1562_s10 = scalar_lea.vmem %s24_s25, 2048  ;;  %p1567_p4 = scmp.lt.s32.totalorder %s24_s25, %s24_s25 }
   0x9   :  { %p1563_p3 = scmp.ne.s32.totalorder %s24_s25, %s1562_s10  ;;  %p1568_p5 = scmp.lt.s32.totalorder %s1562_s10, %s1562_s10 }
   0xb   :  { %p1569_p6 = por %p1568_p5, %p1567_p4 }
   0xd   :  { %p1570_p7 = pnand %p1569_p6, %p1563_p3 }
   0xf   :  { %1573 = shalt.err (!%p1570_p7)
}
  0x10   :  { %s1601_s11 = smov 128   ;;  %s1602_s12 = smov 8  }
  0x11   :  { %29 = dma.hbm_to_vmem [thread:$0]  %s2080_s2, 2048, %s24_s25, [#allocation6], %s1601_s11, %s1601_s11, %s1602_s12  }
  0x12   :  { %s1603_s15 = smov [#allocation7]   ;;  %s1574_s19 = scalar_lea.hbm %s2083_s5, 2048 }
  0x13   :  { %s39_s16 = sshll.u32 %s1603_s15, 4  ;;  %p1575_p8 = scmp.ne.s32.totalorder %s2083_s5, %s1574_s19  ;;  %s40_s16 = int_to_ptr.vmem [resolvable:$true] %s39_s16 }
  0x14   :  { %p1578_p9 = scmp.lt.u32.totalorder %s1574_s19, %s2083_s5 }
  0x16   :  { %p1580_p10 = pnand %p1578_p9, %p1575_p8 }
  0x18   :  { %1583 = shalt.err (!%p1580_p10)
}
  0x19   :  { %s1584_s24 = scalar_lea.vmem %s40_s16, 2048  ;;  %p1589_p12 = scmp.lt.s32.totalorder %s40_s16, %s40_s16 }
  0x1a   :  { %p1585_p11 = scmp.ne.s32.totalorder %s40_s16, %s1584_s24  ;;  %p1590_p13 = scmp.lt.s32.totalorder %s1584_s24, %s1584_s24 }
  0x1c   :  { %p1591_p0 = por %p1590_p13, %p1589_p12 }
  0x1e   :  { %p1592_p1 = pnand %p1591_p0, %p1585_p11 }
  0x20   :  { %1595 = shalt.err (!%p1592_p1)
}
  0x21   :  { %s1604_s2 = smov 64   ;;  %s1605_s25 = smov 4  }
  0x22   :  { %45 = dma.hbm_to_vmem [thread:$0]  %s2083_s5, 2048, %s40_s16, [#allocation8], %s1604_s2, %s1604_s2, %s1605_s25  }
  0x23   :  { %1596 = dma.done.wait [#allocation6], 2048  }
  0x24   :  { %1597 = vsyncadd [#allocation6], 4294965248 }
  0x25   :  { %1598 = dma.done.wait [#allocation8], 2048  }
  0x26   :  { %1599 = vsyncadd [#allocation8], 4294965248  ;;  %v1606_v0 = vmov 0.0   ;;  %v1607_v1 = vmov 0   ;;  %v77_v2 = vld [vmem:[%s2078_s0] sm:$0x3] }
  0x27   :  { %74 = vst [vmem:[#allocation3] sm:$0xff] %v1606_v0  ;;  %73 = vst [vmem:[#allocation2] sm:$0xff] %v1606_v0  ;;  %202 = vmatprep.mubr.bf16.mxu0 %v1607_v1  ;;  %289 = vmatprep.mubr.bf16.mxu1 %v1607_v1  ;;  %v79_v3 = vld [vmem:[%s2079_s1] sm:$0x3]  ;;  %v1692_v4 = vld [vmem:[#allocation5 + $0x4] ss:$8 sps:$4 sm:$0xff]  }
  0x28   :  { %75 = vst [vmem:[#allocation4] sm:$0xff] %v1606_v0  ;;  %76 = vst [vmem:[#allocation4 + $0x8] sm:$0xff] %v1606_v0  ;;  %v1694_v5 = vld [vmem:[#allocation5] ss:$8 sps:$4 sm:$0xff]   ;;  %v1696_v6 = vld [vmem:[#allocation5 + $0x14] ss:$8 sps:$4 sm:$0xff]   ;;  %170 = vmatprep.subr.bf16.mxu0 %v1692_v4  ;;  %257 = vmatprep.subr.bf16.mxu1 %v1692_v4 }
  0x29   :  { %78 = vst [vmem:[#allocation3] sm:$0x3] %v77_v2  ;;  %80 = vst [vmem:[#allocation3 + $0x2] sm:$0x3] %v79_v3  ;;  %171 = vmatpush1.bf16.msra.mxu0 %v1694_v5  ;;  %v1701_v7 = vld [vmem:[#allocation5 + $0x10] ss:$8 sps:$4 sm:$0xff]   ;;  %258 = vmatpush1.bf16.msra.mxu1 %v1694_v5 }
  0x2a   :  { %172 = vmatprep.subr.bf16.mxu0 %v1696_v6  ;;  %v1705_v8 = vld [vmem:[#allocation5 + $0x24] ss:$8 sps:$4 sm:$0xff]   ;;  %259 = vmatprep.subr.bf16.mxu1 %v1696_v6  ;;  %v1711_v10 = vld [vmem:[#allocation5 + $0x20] ss:$8 sps:$4 sm:$0xff]   ;;  %v1717_v11 = vld [vmem:[#allocation5 + $0x34] ss:$8 sps:$4 sm:$0xff]  }
  0x2b   :  { %v1719_v12 = vld [vmem:[#allocation5 + $0x30] ss:$8 sps:$4 sm:$0xff]   ;;  %v1722_v13 = vld [vmem:[#allocation5 + $0x44] ss:$8 sps:$4 sm:$0xff]   ;;  %v1728_v14 = vld [vmem:[#allocation5 + $0x40] ss:$8 sps:$4 sm:$0xff]  }
  0x2c   :  { %v65_v15 = vld [vmem:[#allocation5 + $0x50] sm:$0xff]  ;;  %v66_v16 = vld [vmem:[#allocation5 + $0x58] sm:$0xff]  ;;  %v1736_v18 = vld [vmem:[#allocation5 + $0x64] ss:$8 sps:$4 sm:$0xff]   ;;  %vm86_vm0 = vcmask 654848   ;;  %s1608_s8 = smov 32  }
  0x2d   :  { %173 = vmatpush1.bf16.msra.mxu0 %v1701_v7  ;;  %260 = vmatpush1.bf16.msra.mxu1 %v1701_v7  ;;  %v1730_v17 = vld [vmem:[#allocation5 + $0x54] ss:$8 sps:$4 sm:$0xff]   ;;  %v1739_v19 = vcombine.low %v65_v15, %v66_v16  ;;  %v1745_v20 = vld [vmem:[#allocation5 + $0x60] ss:$8 sps:$4 sm:$0xff]   ;;  %v1753_v22 = vld [vmem:[#allocation5 + $0x70] ss:$8 sps:$4 sm:$0xff]  }
  0x2e   :  { %174 = vmatprep.subr.bf16.mxu0 %v1705_v8  ;;  %261 = vmatprep.subr.bf16.mxu1 %v1705_v8  ;;  %v1749_v21 = vld [vmem:[#allocation5 + $0x74] ss:$8 sps:$4 sm:$0xff]   ;;  %v1783_v26 = vld [vmem:[%s2081_s3] ss:$0 sm:$0xff]  ;;  %s1609_s3 = smov 48   ;;  %vm245_vm1 = vcmask 261120  }
  0x2f   :  { %vm247_vm2 = vcmask 523520   ;;  %v1818_v49 = vld [vmem:[%s2082_s4] ss:$0 sm:$0xff]  ;;  %s1610_s4 = smov 96   ;;  %s1611_s11 = smov 16   ;;  %vm552_vm3 = vcmask 785920  }
  0x30   :  { %v1708_v9 = vld [vmem:[#allocation3] sm:$0xff]  ;;  %s1612_s12 = smov 112   ;;  %s1613_s13 = smov 80   ;;  %vm663_vm4 = vcmask 1048320  }
  0x31   :  { %83 = vrot.lane.b32.xlu0 %v1708_v9, %s1604_s2  ;;  %175 = vmatpush1.bf16.msra.mxu0 %v1711_v10 }
  0x32   :  { %262 = vmatpush1.bf16.msra.mxu1 %v1711_v10  ;;  %176 = vmatprep.subr.bf16.mxu0 %v1717_v11 }
  0x33   :  { %263 = vmatprep.subr.bf16.mxu1 %v1717_v11 }
  0x35   :  { %177 = vmatpush1.bf16.msra.mxu0 %v1719_v12 }
  0x36   :  { %264 = vmatpush1.bf16.msra.mxu1 %v1719_v12  ;;  %178 = vmatprep.subr.bf16.mxu0 %v1722_v13 }
  0x37   :  { %265 = vmatprep.subr.bf16.mxu1 %v1722_v13 }
  0x39   :  { %179 = vmatpush1.bf16.msra.mxu0 %v1728_v14 }
  0x3a   :  { %266 = vmatpush1.bf16.msra.mxu1 %v1728_v14  ;;  %180 = vmatprep.subr.bf16.mxu0 %v1730_v17 }
  0x3b   :  { %267 = vmatprep.subr.bf16.mxu1 %v1730_v17 }
  0x3d   :  { %181 = vmatpush1.bf16.msra.mxu0 %v1739_v19 }
  0x3e   :  { %268 = vmatpush1.bf16.msra.mxu1 %v1739_v19  ;;  %182 = vmatprep.subr.bf16.mxu0 %v1736_v18 }
  0x3f   :  { %269 = vmatprep.subr.bf16.mxu1 %v1736_v18 }
  0x41   :  { %183 = vmatpush1.bf16.msra.mxu0 %v1745_v20 }
  0x42   :  { %270 = vmatpush1.bf16.msra.mxu1 %v1745_v20  ;;  %184 = vmatprep.subr.bf16.mxu0 %v1749_v21 }
  0x43   :  { %271 = vmatprep.subr.bf16.mxu1 %v1749_v21 }
  0x45   :  { %185 = vmatpush1.bf16.msra.mxu0 %v1753_v22 }
  0x46   :  { %272 = vmatpush1.bf16.msra.mxu1 %v1753_v22  ;;  %376 = vmatprep.subr.bf16.mxu0 %v1692_v4 }
  0x47   :  { %486 = vmatprep.subr.bf16.mxu1 %v1692_v4 }
  0xa3   :  { %v84_v23 = vpop.permute.xlu0 %83 }
  0xa4   :  { %87 = vst.msk [vmem:[#allocation2] sm:$0xff] %vm86_vm0, %v84_v23 }
  0xab   :  { %v88_v24 = vld [vmem:[#allocation2] sm:$0xff] }
  0xac   :  { %v89_v25 = vpack.c.bf16 %v88_v24, %v88_v24 }
  0xae   :  { %203 = vmatmul.mubr.bf16.vlgmr.msra.gmra.mrb[0].mxu0 %v89_v25 }
  0xaf   :  { %377 = vmatpush1.bf16.msra.mxu0 %v1694_v5  ;;  %408 = vmatprep.mubr.bf16.mxu0 %v1607_v1 }
  0xb0   :  { %378 = vmatprep.subr.bf16.mxu0 %v1696_v6 }
  0xb3   :  { %379 = vmatpush1.bf16.msra.mxu0 %v1701_v7 }
  0xb4   :  { %380 = vmatprep.subr.bf16.mxu0 %v1705_v8 }
  0xb7   :  { %381 = vmatpush1.bf16.msra.mxu0 %v1711_v10 }
  0xb8   :  { %382 = vmatprep.subr.bf16.mxu0 %v1717_v11 }
  0xbb   :  { %383 = vmatpush1.bf16.msra.mxu0 %v1719_v12 }
  0xbc   :  { %384 = vmatprep.subr.bf16.mxu0 %v1722_v13 }
  0xbf   :  { %385 = vmatpush1.bf16.msra.mxu0 %v1728_v14 }
  0xc0   :  { %386 = vmatprep.subr.bf16.mxu0 %v1730_v17 }
  0xc3   :  { %387 = vmatpush1.bf16.msra.mxu0 %v1739_v19 }
  0xc4   :  { %388 = vmatprep.subr.bf16.mxu0 %v1736_v18 }
  0xc7   :  { %389 = vmatpush1.bf16.msra.mxu0 %v1745_v20 }
  0xc8   :  { %390 = vmatprep.subr.bf16.mxu0 %v1749_v21 }
  0xcb   :  { %391 = vmatpush1.bf16.msra.mxu0 %v1753_v22 }
  0xcc   :  { %593 = vmatprep.subr.bf16.mxu0 %v1692_v4 }
 0x181   :  { %v204_v27 = vpop.f32.mrb[0].mxu0 }
 0x182   :  { %v205_v28 = vpop.f32.mrb[1].mxu0 }
 0x183   :  { %v216_v29 = vadd.f32 %v1783_v26, %v205_v28  ;;  %v207_v30 = vpop.f32.mrb[2].mxu0 }
 0x184   :  { %v208_v31 = vpop.f32.mrb[3].mxu0 }
 0x185   :  { %1416 = vtanh.f32 %v216_v29  ;;  %v1307_v33 = vmul.f32 -1.442695, %v216_v29 }
 0x187   :  { %1418 = vpow2.f32 %v1307_v33 }
 0x18f   :  { %v1417_v32 = vpop.eup %1416 }
 0x190   :  { %226 = vrot.lane.b32.xlu0 %v1417_v32, %s1608_s8 }
 0x191   :  { %v1419_v34 = vpop.eup %1418 }
 0x192   :  { %v220_v35 = vadd.f32 1.0, %v1419_v34 }
 0x194   :  { %1420 = vrcp.f32 %v220_v35 }
 0x19e   :  { %v1421_v36 = vpop.eup %1420 }
 0x19f   :  { %v224_v39 = vmul.f32 0.0, %v1421_v36 }
 0x202   :  { %v227_v37 = vpop.permute.xlu0 %226 }
 0x203   :  { %v229_v38 = vmul.f32 %v1421_v36, %v227_v37 }
 0x205   :  { %231 = vrot.lane.b32.xlu1 %v229_v38, %s1608_s8 }
 0x277   :  { %v232_v40 = vpop.permute.xlu1 %231 }
 0x278   :  { %v1788_v41 = vadd.f32 %v232_v40, %v224_v39 }
 0x27a   :  { %1422 = vtanh.f32 %v1788_v41 }
 0x284   :  { %v1423_v42 = vpop.eup %1422 }
 0x285   :  { %237 = vrot.lane.b32.xlu1 %v1423_v42, %s1608_s8 }
 0x289   :  { %251 = vrot.lane.b32.xlu1 %v1708_v9, %s1609_s3 }
 0x2f7   :  { %v238_v43 = vpop.permute.xlu1 %237 }
 0x2f8   :  { %v240_v44 = vmul.f32 %v1421_v36, %v238_v43 }
 0x2fa   :  { %242 = vrot.lane.b32.xlu0 %v240_v44, %s1604_s2 }
 0x2fb   :  { %v252_v46 = vpop.permute.xlu1 %251 }
 0x36c   :  { %v243_v45 = vpop.permute.xlu0 %242 }
 0x36d   :  { %246 = vst.msk [vmem:[#allocation2] sm:$0xff] %vm245_vm1, %v243_v45 }
 0x36e   :  { %248 = vst.msk [vmem:[#allocation2] sm:$0xff] %vm247_vm2, %v1606_v0 }
 0x36f   :  { %254 = vst.msk [vmem:[#allocation2] sm:$0xff] %vm86_vm0, %v252_v46 }
 0x376   :  { %v255_v47 = vld [vmem:[#allocation2] sm:$0xff] }
 0x377   :  { %v256_v48 = vpack.c.bf16 %v255_v47, %v255_v47 }
 0x379   :  { %290 = vmatmul.mubr.bf16.vlgmr.msra.gmra.mrb[0].mxu1 %v256_v48 }
 0x37a   :  { %487 = vmatpush1.bf16.msra.mxu1 %v1694_v5  ;;  %518 = vmatprep.mubr.bf16.mxu1 %v1607_v1 }
 0x37b   :  { %488 = vmatprep.subr.bf16.mxu1 %v1696_v6 }
 0x37e   :  { %489 = vmatpush1.bf16.msra.mxu1 %v1701_v7 }
 0x37f   :  { %490 = vmatprep.subr.bf16.mxu1 %v1705_v8 }
 0x382   :  { %491 = vmatpush1.bf16.msra.mxu1 %v1711_v10 }
 0x383   :  { %492 = vmatprep.subr.bf16.mxu1 %v1717_v11 }
 0x386   :  { %493 = vmatpush1.bf16.msra.mxu1 %v1719_v12 }
 0x387   :  { %494 = vmatprep.subr.bf16.mxu1 %v1722_v13 }
 0x38a   :  { %495 = vmatpush1.bf16.msra.mxu1 %v1728_v14 }
 0x38b   :  { %496 = vmatprep.subr.bf16.mxu1 %v1730_v17 }
 0x38e   :  { %497 = vmatpush1.bf16.msra.mxu1 %v1739_v19 }
 0x38f   :  { %498 = vmatprep.subr.bf16.mxu1 %v1736_v18 }
 0x392   :  { %499 = vmatpush1.bf16.msra.mxu1 %v1745_v20 }
 0x393   :  { %500 = vmatprep.subr.bf16.mxu1 %v1749_v21 }
 0x396   :  { %501 = vmatpush1.bf16.msra.mxu1 %v1753_v22 }
 0x397   :  { %707 = vmatprep.subr.bf16.mxu1 %v1692_v4 }
 0x44c   :  { %v291_v50 = vpop.f32.mrb[0].mxu1 }
 0x44d   :  { %v304_v51 = vadd.f32 %v1818_v49, %v291_v50  ;;  %v293_v52 = vpop.f32.mrb[1].mxu1 }
 0x44e   :  { %v334_v53 = vadd.f32 %v1783_v26, %v293_v52  ;;  %v295_v54 = vpop.f32.mrb[2].mxu1 }
 0x44f   :  { %1424 = vtanh.f32 %v304_v51  ;;  %v296_v55 = vpop.f32.mrb[3].mxu1  ;;  %v1309_v58 = vmul.f32 -1.442695, %v304_v51 }
 0x450   :  { %1426 = vtanh.f32 %v334_v53  ;;  %v1310_v59 = vmul.f32 -1.442695, %v334_v53 }
 0x451   :  { %1428 = vpow2.f32 %v1309_v58 }
 0x452   :  { %1430 = vpow2.f32 %v1310_v59 }
 0x459   :  { %v1425_v56 = vpop.eup %1424 }
 0x45a   :  { %v1427_v57 = vpop.eup %1426  ;;  %314 = vrot.lane.b32.xlu1 %v1425_v56, %s1608_s8 }
 0x45b   :  { %344 = vrot.lane.b32.xlu0 %v1427_v57, %s1608_s8  ;;  %v1429_v60 = vpop.eup %1428 }
 0x45c   :  { %v1431_v61 = vpop.eup %1430  ;;  %v308_v62 = vadd.f32 1.0, %v1429_v60 }
 0x45d   :  { %v338_v63 = vadd.f32 1.0, %v1431_v61 }
 0x45e   :  { %1432 = vrcp.f32 %v308_v62 }
 0x45f   :  { %1434 = vrcp.f32 %v338_v63 }
 0x468   :  { %v1433_v0 = vpop.eup %1432 }
 0x469   :  { %v1435_v3 = vpop.eup %1434  ;;  %v312_v24 = vmul.f32 0.0, %v1433_v0 }
 0x46a   :  { %v342_v27 = vmul.f32 %v1435_v3, %v1788_v41 }
 0x4cc   :  { %v315_v2 = vpop.permute.xlu1 %314 }
 0x4cd   :  { %v317_v15 = vmul.f32 %v1433_v0, %v315_v2  ;;  %v345_v16 = vpop.permute.xlu0 %344 }
 0x4ce   :  { %v347_v23 = vmul.f32 %v1435_v3, %v345_v16 }
 0x4cf   :  { %319 = vrot.lane.b32.xlu1 %v317_v15, %s1608_s8 }
 0x4d0   :  { %349 = vrot.lane.b32.xlu0 %v347_v23, %s1608_s8 }
 0x541   :  { %v320_v25 = vpop.permute.xlu1 %319 }
 0x542   :  { %v1827_v28 = vadd.f32 %v320_v25, %v312_v24  ;;  %v350_v29 = vpop.permute.xlu0 %349 }
 0x543   :  { %v1829_v30 = vadd.f32 %v350_v29, %v342_v27 }
 0x544   :  { %1436 = vtanh.f32 %v1827_v28 }
 0x545   :  { %1438 = vtanh.f32 %v1829_v30 }
 0x54e   :  { %v1437_v31 = vpop.eup %1436 }
 0x54f   :  { %v1439_v32 = vpop.eup %1438  ;;  %325 = vrot.lane.b32.xlu1 %v1437_v31, %s1608_s8 }
 0x550   :  { %355 = vrot.lane.b32.xlu0 %v1439_v32, %s1608_s8 }
 0x5c1   :  { %v326_v33 = vpop.permute.xlu1 %325 }
 0x5c2   :  { %v1835_v34 = vmul.f32 %v1433_v0, %v326_v33  ;;  %v356_v35 = vpop.permute.xlu0 %355 }
 0x5c3   :  { %v358_v36 = vmul.f32 %v1435_v3, %v356_v35 }
 0x5c4   :  { %364 = vrot.lane.b32.xlu1 %v1835_v34, %s1610_s4 }
 0x5c5   :  { %360 = vrot.lane.b32.xlu0 %v358_v36, %s1604_s2 }
 0x5c9   :  { %370 = vrot.lane.b32.xlu0 %v1708_v9, %s1608_s8 }
 0x636   :  { %v365_v38 = vpop.permute.xlu1 %364 }
 0x637   :  { %v361_v37 = vpop.permute.xlu0 %360 }
 0x638   :  { %363 = vst.msk [vmem:[#allocation2] sm:$0xff] %vm245_vm1, %v361_v37 }
 0x639   :  { %367 = vst.msk [vmem:[#allocation2] sm:$0xff] %vm247_vm2, %v365_v38 }
 0x63b   :  { %v371_v39 = vpop.permute.xlu0 %370 }
 0x63c   :  { %373 = vst.msk [vmem:[#allocation2] sm:$0xff] %vm86_vm0, %v371_v39 }
 0x643   :  { %v374_v40 = vld [vmem:[#allocation2] sm:$0xff] }
 0x644   :  { %v375_v41 = vpack.c.bf16 %v374_v40, %v374_v40 }
 0x646   :  { %409 = vmatmul.mubr.bf16.vlgmr.msra.gmra.mrb[4].mxu0 %v375_v41 }
 0x647   :  { %594 = vmatpush1.bf16.msra.mxu0 %v1694_v5  ;;  %625 = vmatprep.mubr.bf16.mxu0 %v1607_v1 }
 0x648   :  { %595 = vmatprep.subr.bf16.mxu0 %v1696_v6 }
 0x64b   :  { %596 = vmatpush1.bf16.msra.mxu0 %v1701_v7 }
 0x64c   :  { %597 = vmatprep.subr.bf16.mxu0 %v1705_v8 }
 0x64f   :  { %598 = vmatpush1.bf16.msra.mxu0 %v1711_v10 }
 0x650   :  { %599 = vmatprep.subr.bf16.mxu0 %v1717_v11 }
 0x653   :  { %600 = vmatpush1.bf16.msra.mxu0 %v1719_v12 }
 0x654   :  { %601 = vmatprep.subr.bf16.mxu0 %v1722_v13 }
 0x657   :  { %602 = vmatpush1.bf16.msra.mxu0 %v1728_v14 }
 0x658   :  { %603 = vmatprep.subr.bf16.mxu0 %v1730_v17 }
 0x65b   :  { %604 = vmatpush1.bf16.msra.mxu0 %v1739_v19 }
 0x65c   :  { %605 = vmatprep.subr.bf16.mxu0 %v1736_v18 }
 0x65f   :  { %606 = vmatpush1.bf16.msra.mxu0 %v1745_v20 }
 0x660   :  { %607 = vmatprep.subr.bf16.mxu0 %v1749_v21 }
 0x663   :  { %608 = vmatpush1.bf16.msra.mxu0 %v1753_v22 }
 0x664   :  { %820 = vmatprep.subr.bf16.mxu0 %v1692_v4 }
 0x719   :  { %v410_v42 = vpop.f32.mrb[4].mxu0 }
 0x71a   :  { %v417_v43 = vadd.f32 %v1818_v49, %v410_v42  ;;  %v412_v44 = vpop.f32.mrb[5].mxu0 }
 0x71b   :  { %v447_v45 = vadd.f32 %v1783_v26, %v412_v44  ;;  %v414_v46 = vpop.f32.mrb[6].mxu0 }
 0x71c   :  { %1440 = vtanh.f32 %v417_v43  ;;  %v415_v47 = vpop.f32.mrb[7].mxu0  ;;  %v1311_v51 = vmul.f32 -1.442695, %v417_v43 }
 0x71d   :  { %1442 = vtanh.f32 %v447_v45  ;;  %v1312_v52 = vmul.f32 -1.442695, %v447_v45 }
 0x71e   :  { %1444 = vpow2.f32 %v1311_v51 }
 0x71f   :  { %1446 = vpow2.f32 %v1312_v52 }
 0x726   :  { %v1441_v48 = vpop.eup %1440 }
 0x727   :  { %v1443_v50 = vpop.eup %1442  ;;  %427 = vrot.lane.b32.xlu0 %v1441_v48, %s1608_s8 }
 0x728   :  { %457 = vrot.lane.b32.xlu1 %v1443_v50, %s1608_s8  ;;  %v1445_v53 = vpop.eup %1444 }
 0x729   :  { %v1447_v54 = vpop.eup %1446  ;;  %v421_v55 = vadd.f32 1.0, %v1445_v53 }
 0x72a   :  { %v451_v56 = vadd.f32 1.0, %v1447_v54 }
 0x72b   :  { %1448 = vrcp.f32 %v421_v55 }
 0x72c   :  { %1450 = vrcp.f32 %v451_v56 }
 0x735   :  { %v1449_v57 = vpop.eup %1448 }
 0x736   :  { %v1451_v59 = vpop.eup %1450  ;;  %v425_v63 = vmul.f32 %v1449_v57, %v1827_v28 }
 0x737   :  { %v455_v2 = vmul.f32 %v1451_v59, %v1829_v30 }
 0x799   :  { %v428_v58 = vpop.permute.xlu0 %427 }
 0x79a   :  { %v430_v60 = vmul.f32 %v1449_v57, %v428_v58  ;;  %v458_v61 = vpop.permute.xlu1 %457 }
 0x79b   :  { %v460_v62 = vmul.f32 %v1451_v59, %v458_v61 }
 0x79c   :  { %432 = vrot.lane.b32.xlu0 %v430_v60, %s1608_s8 }
 0x79d   :  { %462 = vrot.lane.b32.xlu1 %v460_v62, %s1608_s8 }
 0x80e   :  { %v433_v0 = vpop.permute.xlu0 %432 }
 0x80f   :  { %v1870_v3 = vadd.f32 %v433_v0, %v425_v63  ;;  %v463_v15 = vpop.permute.xlu1 %462 }
 0x810   :  { %v1872_v16 = vadd.f32 %v463_v15, %v455_v2 }
 0x811   :  { %1452 = vtanh.f32 %v1870_v3 }
 0x812   :  { %1454 = vtanh.f32 %v1872_v16 }
 0x81b   :  { %v1453_v23 = vpop.eup %1452 }
 0x81c   :  { %v1455_v24 = vpop.eup %1454  ;;  %438 = vrot.lane.b32.xlu0 %v1453_v23, %s1608_s8 }
 0x81d   :  { %468 = vrot.lane.b32.xlu1 %v1455_v24, %s1608_s8 }
 0x88e   :  { %v439_v25 = vpop.permute.xlu0 %438 }
 0x88f   :  { %v441_v27 = vmul.f32 %v1449_v57, %v439_v25  ;;  %v469_v28 = vpop.permute.xlu1 %468 }
 0x890   :  { %v471_v29 = vmul.f32 %v1451_v59, %v469_v28 }
 0x891   :  { %443 = vrot.lane.b32.xlu0 %v441_v27, %s1610_s4 }
 0x892   :  { %473 = vrot.lane.b32.xlu1 %v471_v29, %s1604_s2 }
 0x896   :  { %480 = vrot.lane.b32.xlu1 %v1708_v9, %s1611_s11 }
 0x903   :  { %v1881_v31 = vpop.permute.xlu0 %443 }
 0x904   :  { %v474_v30 = vpop.permute.xlu1 %473 }
 0x905   :  { %476 = vst.msk [vmem:[#allocation2] sm:$0xff] %vm245_vm1, %v474_v30 }
 0x906   :  { %477 = vst.msk [vmem:[#allocation2] sm:$0xff] %vm247_vm2, %v1881_v31 }
 0x908   :  { %v481_v32 = vpop.permute.xlu1 %480 }
 0x909   :  { %483 = vst.msk [vmem:[#allocation2] sm:$0xff] %vm86_vm0, %v481_v32 }
 0x910   :  { %v484_v33 = vld [vmem:[#allocation2] sm:$0xff] }
 0x911   :  { %v485_v35 = vpack.c.bf16 %v484_v33, %v484_v33 }
 0x913   :  { %519 = vmatmul.mubr.bf16.vlgmr.msra.gmra.mrb[4].mxu1 %v485_v35 }
 0x914   :  { %708 = vmatpush1.bf16.msra.mxu1 %v1694_v5  ;;  %739 = vmatprep.mubr.bf16.mxu1 %v1607_v1 }
 0x915   :  { %709 = vmatprep.subr.bf16.mxu1 %v1696_v6 }
 0x918   :  { %710 = vmatpush1.bf16.msra.mxu1 %v1701_v7 }
 0x919   :  { %711 = vmatprep.subr.bf16.mxu1 %v1705_v8 }
 0x91c   :  { %712 = vmatpush1.bf16.msra.mxu1 %v1711_v10 }
 0x91d   :  { %713 = vmatprep.subr.bf16.mxu1 %v1717_v11 }
 0x920   :  { %714 = vmatpush1.bf16.msra.mxu1 %v1719_v12 }
 0x921   :  { %715 = vmatprep.subr.bf16.mxu1 %v1722_v13 }
 0x924   :  { %716 = vmatpush1.bf16.msra.mxu1 %v1728_v14 }
 0x925   :  { %717 = vmatprep.subr.bf16.mxu1 %v1730_v17 }
 0x928   :  { %718 = vmatpush1.bf16.msra.mxu1 %v1739_v19 }
 0x929   :  { %719 = vmatprep.subr.bf16.mxu1 %v1736_v18 }
 0x92c   :  { %720 = vmatpush1.bf16.msra.mxu1 %v1745_v20 }
 0x92d   :  { %721 = vmatprep.subr.bf16.mxu1 %v1749_v21 }
 0x930   :  { %722 = vmatpush1.bf16.msra.mxu1 %v1753_v22 }
 0x931   :  { %930 = vmatprep.subr.bf16.mxu1 %v1692_v4 }
 0x9e6   :  { %v520_v36 = vpop.f32.mrb[4].mxu1 }
 0x9e7   :  { %v527_v37 = vadd.f32 %v1818_v49, %v520_v36  ;;  %v522_v38 = vpop.f32.mrb[5].mxu1 }
 0x9e8   :  { %v554_v39 = vadd.f32 %v1783_v26, %v522_v38  ;;  %v524_v40 = vpop.f32.mrb[6].mxu1 }
 0x9e9   :  { %1456 = vtanh.f32 %v527_v37  ;;  %v525_v41 = vpop.f32.mrb[7].mxu1  ;;  %v1313_v44 = vmul.f32 -1.442695, %v527_v37 }
 0x9ea   :  { %1458 = vtanh.f32 %v554_v39  ;;  %v1314_v45 = vmul.f32 -1.442695, %v554_v39 }
 0x9eb   :  { %1460 = vpow2.f32 %v1313_v44 }
 0x9ec   :  { %1462 = vpow2.f32 %v1314_v45 }
 0x9f3   :  { %v1457_v42 = vpop.eup %1456 }
 0x9f4   :  { %v1459_v43 = vpop.eup %1458  ;;  %537 = vrot.lane.b32.xlu1 %v1457_v42, %s1608_s8 }
 0x9f5   :  { %564 = vrot.lane.b32.xlu0 %v1459_v43, %s1608_s8  ;;  %v1461_v46 = vpop.eup %1460 }
 0x9f6   :  { %v1463_v47 = vpop.eup %1462  ;;  %v531_v48 = vadd.f32 1.0, %v1461_v46 }
 0x9f7   :  { %v558_v50 = vadd.f32 1.0, %v1463_v47 }
 0x9f8   :  { %1464 = vrcp.f32 %v531_v48 }
 0x9f9   :  { %1466 = vrcp.f32 %v558_v50 }
 0xa02   :  { %v1465_v51 = vpop.eup %1464 }
 0xa03   :  { %v1467_v53 = vpop.eup %1466  ;;  %v535_v57 = vmul.f32 %v1465_v51, %v1870_v3 }
 0xa04   :  { %v562_v59 = vmul.f32 %v1467_v53, %v1872_v16 }
 0xa66   :  { %v538_v52 = vpop.permute.xlu1 %537 }
 0xa67   :  { %v540_v54 = vmul.f32 %v1465_v51, %v538_v52  ;;  %v565_v55 = vpop.permute.xlu0 %564 }
 0xa68   :  { %v567_v56 = vmul.f32 %v1467_v53, %v565_v55 }
 0xa69   :  { %542 = vrot.lane.b32.xlu1 %v540_v54, %s1608_s8 }
 0xa6a   :  { %569 = vrot.lane.b32.xlu0 %v567_v56, %s1608_s8 }
 0xadb   :  { %v543_v58 = vpop.permute.xlu1 %542 }
 0xadc   :  { %v1912_v60 = vadd.f32 %v543_v58, %v535_v57  ;;  %v570_v61 = vpop.permute.xlu0 %569 }
 0xadd   :  { %v1914_v62 = vadd.f32 %v570_v61, %v562_v59 }
 0xade   :  { %1468 = vtanh.f32 %v1912_v60 }
 0xadf   :  { %1470 = vtanh.f32 %v1914_v62 }
 0xae8   :  { %v1469_v63 = vpop.eup %1468 }
 0xae9   :  { %v1471_v0 = vpop.eup %1470  ;;  %548 = vrot.lane.b32.xlu1 %v1469_v63, %s1608_s8 }
 0xaea   :  { %575 = vrot.lane.b32.xlu0 %v1471_v0, %s1608_s8 }
 0xb5b   :  { %v549_v2 = vpop.permute.xlu1 %548 }
 0xb5c   :  { %v1920_v3 = vmul.f32 %v1465_v51, %v549_v2  ;;  %v576_v15 = vpop.permute.xlu0 %575 }
 0xb5d   :  { %v578_v16 = vmul.f32 %v1467_v53, %v576_v15 }
 0xb5e   :  { %585 = vrot.lane.b32.xlu1 %v1920_v3, %s1610_s4 }
 0xb5f   :  { %580 = vrot.lane.b32.xlu0 %v578_v16, %s1604_s2 }
 0xbd0   :  { %v586_v24 = vpop.permute.xlu1 %585 }
 0xbd1   :  { %v581_v23 = vpop.permute.xlu0 %580 }
 0xbd2   :  { %583 = vst.msk [vmem:[#allocation2] sm:$0xff] %vm245_vm1, %v581_v23 }
 0xbd3   :  { %588 = vst.msk [vmem:[#allocation2] sm:$0xff] %vm247_vm2, %v586_v24 }
 0xbd4   :  { %590 = vst.msk [vmem:[#allocation2] sm:$0xff] %vm86_vm0, %v1708_v9 }
 0xbdb   :  { %v591_v25 = vld [vmem:[#allocation2] sm:$0xff] }
 0xbdc   :  { %v592_v27 = vpack.c.bf16 %v591_v25, %v591_v25 }
 0xbde   :  { %626 = vmatmul.mubr.bf16.vlgmr.msra.gmra.mrb[8].mxu0 %v592_v27 }
 0xbdf   :  { %821 = vmatpush1.bf16.msra.mxu0 %v1694_v5  ;;  %852 = vmatprep.mubr.bf16.mxu0 %v1607_v1 }
 0xbe0   :  { %822 = vmatprep.subr.bf16.mxu0 %v1696_v6 }
 0xbe3   :  { %823 = vmatpush1.bf16.msra.mxu0 %v1701_v7 }
 0xbe4   :  { %824 = vmatprep.subr.bf16.mxu0 %v1705_v8 }
 0xbe7   :  { %825 = vmatpush1.bf16.msra.mxu0 %v1711_v10 }
 0xbe8   :  { %826 = vmatprep.subr.bf16.mxu0 %v1717_v11 }
 0xbeb   :  { %827 = vmatpush1.bf16.msra.mxu0 %v1719_v12 }
 0xbec   :  { %828 = vmatprep.subr.bf16.mxu0 %v1722_v13 }
 0xbef   :  { %829 = vmatpush1.bf16.msra.mxu0 %v1728_v14 }
 0xbf0   :  { %830 = vmatprep.subr.bf16.mxu0 %v1730_v17 }
 0xbf3   :  { %831 = vmatpush1.bf16.msra.mxu0 %v1739_v19 }
 0xbf4   :  { %832 = vmatprep.subr.bf16.mxu0 %v1736_v18 }
 0xbf7   :  { %833 = vmatpush1.bf16.msra.mxu0 %v1745_v20 }
 0xbf8   :  { %834 = vmatprep.subr.bf16.mxu0 %v1749_v21 }
 0xbfb   :  { %835 = vmatpush1.bf16.msra.mxu0 %v1753_v22 }
 0xbfc   :  { %1034 = vmatprep.subr.bf16.mxu0 %v1692_v4 }
 0xcb1   :  { %v627_v28 = vpop.f32.mrb[8].mxu0 }
 0xcb2   :  { %v634_v29 = vadd.f32 %v1818_v49, %v627_v28  ;;  %v629_v30 = vpop.f32.mrb[9].mxu0 }
 0xcb3   :  { %v665_v32 = vadd.f32 %v1783_v26, %v629_v30  ;;  %v631_v33 = vpop.f32.mrb[10].mxu0 }
 0xcb4   :  { %1472 = vtanh.f32 %v634_v29  ;;  %v632_v35 = vpop.f32.mrb[11].mxu0  ;;  %v1315_v38 = vmul.f32 -1.442695, %v634_v29 }
 0xcb5   :  { %1474 = vtanh.f32 %v665_v32  ;;  %v1316_v39 = vmul.f32 -1.442695, %v665_v32 }
 0xcb6   :  { %1476 = vpow2.f32 %v1315_v38 }
 0xcb7   :  { %1478 = vpow2.f32 %v1316_v39 }
 0xcbe   :  { %v1473_v36 = vpop.eup %1472 }
 0xcbf   :  { %v1475_v37 = vpop.eup %1474  ;;  %644 = vrot.lane.b32.xlu1 %v1473_v36, %s1608_s8 }
 0xcc0   :  { %675 = vrot.lane.b32.xlu0 %v1475_v37, %s1608_s8  ;;  %v1477_v4 = vpop.eup %1476 }
 0xcc1   :  { %v1479_v40 = vpop.eup %1478  ;;  %v638_v41 = vadd.f32 1.0, %v1477_v4 }
 0xcc2   :  { %v669_v42 = vadd.f32 1.0, %v1479_v40 }
 0xcc3   :  { %1480 = vrcp.f32 %v638_v41 }
 0xcc4   :  { %1482 = vrcp.f32 %v669_v42 }
 0xccd   :  { %v1481_v43 = vpop.eup %1480 }
 0xcce   :  { %v1483_v45 = vpop.eup %1482  ;;  %v642_v50 = vmul.f32 %v1481_v43, %v1912_v60 }
 0xccf   :  { %v673_v52 = vmul.f32 %v1483_v45, %v1914_v62 }
 0xd31   :  { %v645_v44 = vpop.permute.xlu1 %644 }
 0xd32   :  { %v647_v46 = vmul.f32 %v1481_v43, %v645_v44  ;;  %v676_v47 = vpop.permute.xlu0 %675 }
 0xd33   :  { %v678_v48 = vmul.f32 %v1483_v45, %v676_v47 }
 0xd34   :  { %649 = vrot.lane.b32.xlu1 %v647_v46, %s1608_s8 }
 0xd35   :  { %680 = vrot.lane.b32.xlu0 %v678_v48, %s1608_s8 }
 0xda6   :  { %v650_v51 = vpop.permute.xlu1 %649 }
 0xda7   :  { %v1954_v53 = vadd.f32 %v650_v51, %v642_v50  ;;  %v681_v54 = vpop.permute.xlu0 %680 }
 0xda8   :  { %v1956_v55 = vadd.f32 %v681_v54, %v673_v52  ;;  %v1544_v54 = vld [vmem:[#allocation5] ss:$8 sps:$4 sm:$0xff]  }
 0xda9   :  { %1484 = vtanh.f32 %v1954_v53 }
 0xdaa   :  { %1486 = vtanh.f32 %v1956_v55 }
 0xdb3   :  { %v1485_v56 = vpop.eup %1484 }
 0xdb4   :  { %v1487_v57 = vpop.eup %1486  ;;  %655 = vrot.lane.b32.xlu1 %v1485_v56, %s1608_s8  ;;  %v1546_v56 = vld [vmem:[#allocation5 + $0x10] ss:$8 sps:$4 sm:$0xff]  }
 0xdb5   :  { %686 = vrot.lane.b32.xlu0 %v1487_v57, %s1608_s8  ;;  %v1547_v57 = vld [vmem:[#allocation5 + $0x24] ss:$8 sps:$4 sm:$0xff]  }
 0xe26   :  { %v656_v58 = vpop.permute.xlu1 %655 }
 0xe27   :  { %v1962_v59 = vmul.f32 %v1481_v43, %v656_v58  ;;  %v687_v60 = vpop.permute.xlu0 %686  ;;  %v1548_v58 = vld [vmem:[#allocation5 + $0x20] ss:$8 sps:$4 sm:$0xff]  }
 0xe28   :  { %v689_v61 = vmul.f32 %v1483_v45, %v687_v60  ;;  %v1549_v60 = vld [vmem:[#allocation5 + $0x34] ss:$8 sps:$4 sm:$0xff]  }
 0xe29   :  { %695 = vrot.lane.b32.xlu1 %v1962_v59, %s1610_s4 }
 0xe2a   :  { %691 = vrot.lane.b32.xlu0 %v689_v61, %s1604_s2  ;;  %v1550_v61 = vld [vmem:[#allocation5 + $0x30] ss:$8 sps:$4 sm:$0xff]  }
 0xe2e   :  { %701 = vrot.lane.b32.xlu0 %v1708_v9, %s1612_s12 }
 0xe9b   :  { %v696_v63 = vpop.permute.xlu1 %695 }
 0xe9c   :  { %v692_v62 = vpop.permute.xlu0 %691 }
 0xe9d   :  { %694 = vst.msk [vmem:[#allocation2] sm:$0xff] %vm245_vm1, %v692_v62  ;;  %v1551_v62 = vld [vmem:[#allocation5 + $0x44] ss:$8 sps:$4 sm:$0xff]  }
 0xe9e   :  { %698 = vst.msk [vmem:[#allocation2] sm:$0xff] %vm247_vm2, %v696_v63 }
 0xea0   :  { %v702_v0 = vpop.permute.xlu0 %701 }
 0xea1   :  { %704 = vst.msk [vmem:[#allocation2] sm:$0xff] %vm86_vm0, %v702_v0 }
 0xea8   :  { %v705_v2 = vld [vmem:[#allocation2] sm:$0xff] }
 0xea9   :  { %v706_v15 = vpack.c.bf16 %v705_v2, %v705_v2 }
 0xeab   :  { %740 = vmatmul.mubr.bf16.vlgmr.msra.gmra.mrb[8].mxu1 %v706_v15 }
 0xeac   :  { %931 = vmatpush1.bf16.msra.mxu1 %v1694_v5  ;;  %962 = vmatprep.mubr.bf16.mxu1 %v1607_v1 }
 0xead   :  { %932 = vmatprep.subr.bf16.mxu1 %v1696_v6 }
 0xeb0   :  { %933 = vmatpush1.bf16.msra.mxu1 %v1701_v7 }
 0xeb1   :  { %934 = vmatprep.subr.bf16.mxu1 %v1705_v8 }
 0xeb4   :  { %935 = vmatpush1.bf16.msra.mxu1 %v1711_v10 }
 0xeb5   :  { %936 = vmatprep.subr.bf16.mxu1 %v1717_v11 }
 0xeb8   :  { %937 = vmatpush1.bf16.msra.mxu1 %v1719_v12 }
 0xeb9   :  { %938 = vmatprep.subr.bf16.mxu1 %v1722_v13 }
 0xebc   :  { %939 = vmatpush1.bf16.msra.mxu1 %v1728_v14 }
 0xebd   :  { %940 = vmatprep.subr.bf16.mxu1 %v1730_v17 }
 0xec0   :  { %941 = vmatpush1.bf16.msra.mxu1 %v1739_v19 }
 0xec1   :  { %942 = vmatprep.subr.bf16.mxu1 %v1736_v18 }
 0xec4   :  { %943 = vmatpush1.bf16.msra.mxu1 %v1745_v20 }
 0xec5   :  { %944 = vmatprep.subr.bf16.mxu1 %v1749_v21 }
 0xec8   :  { %945 = vmatpush1.bf16.msra.mxu1 %v1753_v22 }
 0xf7e   :  { %v741_v5 = vpop.f32.mrb[8].mxu1 }
 0xf7f   :  { %v748_v6 = vadd.f32 %v1818_v49, %v741_v5  ;;  %v743_v7 = vpop.f32.mrb[9].mxu1 }
 0xf80   :  { %v778_v8 = vadd.f32 %v1783_v26, %v743_v7  ;;  %v745_v10 = vpop.f32.mrb[10].mxu1 }
 0xf81   :  { %1488 = vtanh.f32 %v748_v6  ;;  %v746_v11 = vpop.f32.mrb[11].mxu1  ;;  %v1317_v16 = vmul.f32 -1.442695, %v748_v6 }
 0xf82   :  { %1490 = vtanh.f32 %v778_v8  ;;  %v1318_v23 = vmul.f32 -1.442695, %v778_v8 }
 0xf83   :  { %1492 = vpow2.f32 %v1317_v16 }
 0xf84   :  { %1494 = vpow2.f32 %v1318_v23 }
 0xf8b   :  { %v1489_v12 = vpop.eup %1488 }
 0xf8c   :  { %v1491_v13 = vpop.eup %1490  ;;  %758 = vrot.lane.b32.xlu0 %v1489_v12, %s1608_s8 }
 0xf8d   :  { %788 = vrot.lane.b32.xlu1 %v1491_v13, %s1608_s8  ;;  %v1493_v24 = vpop.eup %1492 }
 0xf8e   :  { %v1495_v25 = vpop.eup %1494  ;;  %v752_v27 = vadd.f32 1.0, %v1493_v24 }
 0xf8f   :  { %v782_v28 = vadd.f32 1.0, %v1495_v25 }
 0xf90   :  { %1496 = vrcp.f32 %v752_v27 }
 0xf91   :  { %1498 = vrcp.f32 %v782_v28 }
 0xf9a   :  { %v1497_v29 = vpop.eup %1496 }
 0xf9b   :  { %v1499_v32 = vpop.eup %1498  ;;  %v756_v37 = vmul.f32 %v1497_v29, %v1954_v53 }
 0xf9c   :  { %v786_v39 = vmul.f32 %v1499_v32, %v1956_v55  ;;  %v1545_v55 = vld [vmem:[#allocation5 + $0x14] ss:$8 sps:$4 sm:$0xff]  }
 0xffe   :  { %v759_v30 = vpop.permute.xlu0 %758 }
 0xfff   :  { %v761_v33 = vmul.f32 %v1497_v29, %v759_v30  ;;  %v789_v35 = vpop.permute.xlu1 %788 }
0x1000   :  { %v791_v36 = vmul.f32 %v1499_v32, %v789_v35 }
0x1001   :  { %763 = vrot.lane.b32.xlu0 %v761_v33, %s1608_s8 }
0x1002   :  { %793 = vrot.lane.b32.xlu1 %v791_v36, %s1608_s8 }
0x1073   :  { %v764_v38 = vpop.permute.xlu0 %763 }
0x1074   :  { %v1995_v4 = vadd.f32 %v764_v38, %v756_v37  ;;  %v794_v40 = vpop.permute.xlu1 %793 }
0x1075   :  { %v1997_v41 = vadd.f32 %v794_v40, %v786_v39 }
0x1076   :  { %1500 = vtanh.f32 %v1995_v4 }
0x1077   :  { %1502 = vtanh.f32 %v1997_v41 }
0x1080   :  { %v1501_v42 = vpop.eup %1500 }
0x1081   :  { %v1503_v43 = vpop.eup %1502  ;;  %769 = vrot.lane.b32.xlu0 %v1501_v42, %s1608_s8 }
0x1082   :  { %799 = vrot.lane.b32.xlu1 %v1503_v43, %s1608_s8 }
0x10f3   :  { %v770_v44 = vpop.permute.xlu0 %769 }
0x10f4   :  { %v2003_v45 = vmul.f32 %v1497_v29, %v770_v44  ;;  %v800_v46 = vpop.permute.xlu1 %799 }
0x10f5   :  { %v802_v47 = vmul.f32 %v1499_v32, %v800_v46 }
0x10f6   :  { %808 = vrot.lane.b32.xlu0 %v2003_v45, %s1610_s4 }
0x10f7   :  { %804 = vrot.lane.b32.xlu1 %v802_v47, %s1604_s2 }
0x10fb   :  { %814 = vrot.lane.b32.xlu1 %v1708_v9, %s1610_s4 }
0x1168   :  { %v809_v50 = vpop.permute.xlu0 %808 }
0x1169   :  { %v805_v48 = vpop.permute.xlu1 %804 }
0x116a   :  { %807 = vst.msk [vmem:[#allocation2] sm:$0xff] %vm245_vm1, %v805_v48 }
0x116b   :  { %811 = vst.msk [vmem:[#allocation2] sm:$0xff] %vm247_vm2, %v809_v50 }
0x116d   :  { %v815_v51 = vpop.permute.xlu1 %814 }
0x116e   :  { %817 = vst.msk [vmem:[#allocation2] sm:$0xff] %vm86_vm0, %v815_v51 }
0x1175   :  { %v818_v52 = vld [vmem:[#allocation2] sm:$0xff] }
0x1176   :  { %v819_v53 = vpack.c.bf16 %v818_v52, %v818_v52 }
0x1178   :  { %853 = vmatmul.mubr.bf16.vlgmr.msra.gmra.mrb[12].mxu0 %v819_v53 }
0x1179   :  { %1035 = vmatpush1.bf16.msra.mxu0 %v1544_v54  ;;  %1066 = vmatprep.mubr.bf16.mxu0 %v1607_v1 }
0x117a   :  { %1036 = vmatprep.subr.bf16.mxu0 %v1545_v55 }
0x117d   :  { %1037 = vmatpush1.bf16.msra.mxu0 %v1546_v56 }
0x117e   :  { %1038 = vmatprep.subr.bf16.mxu0 %v1547_v57 }
0x1181   :  { %1039 = vmatpush1.bf16.msra.mxu0 %v1548_v58 }
0x1182   :  { %1040 = vmatprep.subr.bf16.mxu0 %v1549_v60 }
0x1185   :  { %1041 = vmatpush1.bf16.msra.mxu0 %v1550_v61 }
0x1186   :  { %1042 = vmatprep.subr.bf16.mxu0 %v1551_v62 }
0x1189   :  { %1043 = vmatpush1.bf16.msra.mxu0 %v1728_v14 }
0x118a   :  { %1044 = vmatprep.subr.bf16.mxu0 %v1730_v17 }
0x118d   :  { %1045 = vmatpush1.bf16.msra.mxu0 %v1739_v19 }
0x118e   :  { %1046 = vmatprep.subr.bf16.mxu0 %v1736_v18 }
0x1191   :  { %1047 = vmatpush1.bf16.msra.mxu0 %v1745_v20 }
0x1192   :  { %1048 = vmatprep.subr.bf16.mxu0 %v1749_v21 }
0x1195   :  { %1049 = vmatpush1.bf16.msra.mxu0 %v1753_v22 }
0x124b   :  { %v854_v1 = vpop.f32.mrb[12].mxu0 }
0x124c   :  { %v861_v63 = vadd.f32 %v1818_v49, %v854_v1  ;;  %v856_v0 = vpop.f32.mrb[13].mxu0 }
0x124d   :  { %v891_v2 = vadd.f32 %v1783_v26, %v856_v0  ;;  %v858_v15 = vpop.f32.mrb[14].mxu0 }
0x124e   :  { %1504 = vtanh.f32 %v861_v63  ;;  %v859_v14 = vpop.f32.mrb[15].mxu0  ;;  %v1319_v18 = vmul.f32 -1.442695, %v861_v63 }
0x124f   :  { %1506 = vtanh.f32 %v891_v2  ;;  %v1320_v20 = vmul.f32 -1.442695, %v891_v2 }
0x1250   :  { %1508 = vpow2.f32 %v1319_v18 }
0x1251   :  { %1510 = vpow2.f32 %v1320_v20 }
0x1258   :  { %v1505_v17 = vpop.eup %1504 }
0x1259   :  { %v1507_v19 = vpop.eup %1506  ;;  %871 = vrot.lane.b32.xlu1 %v1505_v17, %s1608_s8 }
0x125a   :  { %901 = vrot.lane.b32.xlu0 %v1507_v19, %s1608_s8  ;;  %v1509_v21 = vpop.eup %1508 }
0x125b   :  { %v1511_v22 = vpop.eup %1510  ;;  %v865_v5 = vadd.f32 1.0, %v1509_v21 }
0x125c   :  { %v895_v6 = vadd.f32 1.0, %v1511_v22 }
0x125d   :  { %1512 = vrcp.f32 %v865_v5 }
0x125e   :  { %1514 = vrcp.f32 %v895_v6 }
0x1267   :  { %v1513_v7 = vpop.eup %1512 }
0x1268   :  { %v1515_v10 = vpop.eup %1514  ;;  %v869_v16 = vmul.f32 %v1513_v7, %v1995_v4 }
0x1269   :  { %v899_v24 = vmul.f32 %v1515_v10, %v1997_v41 }
0x12cb   :  { %v872_v8 = vpop.permute.xlu1 %871 }
0x12cc   :  { %v874_v11 = vmul.f32 %v1513_v7, %v872_v8  ;;  %v902_v12 = vpop.permute.xlu0 %901 }
0x12cd   :  { %v904_v13 = vmul.f32 %v1515_v10, %v902_v12 }
0x12ce   :  { %876 = vrot.lane.b32.xlu1 %v874_v11, %s1608_s8 }
0x12cf   :  { %906 = vrot.lane.b32.xlu0 %v904_v13, %s1608_s8 }
0x1340   :  { %v877_v23 = vpop.permute.xlu1 %876 }
0x1341   :  { %v879_v25 = vadd.f32 %v877_v23, %v869_v16  ;;  %v907_v27 = vpop.permute.xlu0 %906 }
0x1342   :  { %v909_v28 = vadd.f32 %v907_v27, %v899_v24 }
0x1343   :  { %1516 = vtanh.f32 %v879_v25 }
0x1344   :  { %1518 = vtanh.f32 %v909_v28 }
0x134d   :  { %v1517_v29 = vpop.eup %1516 }
0x134e   :  { %v1519_v30 = vpop.eup %1518  ;;  %882 = vrot.lane.b32.xlu1 %v1517_v29, %s1608_s8 }
0x134f   :  { %912 = vrot.lane.b32.xlu0 %v1519_v30, %s1608_s8 }
0x13c0   :  { %v883_v32 = vpop.permute.xlu1 %882 }
0x13c1   :  { %v885_v33 = vmul.f32 %v1513_v7, %v883_v32  ;;  %v913_v35 = vpop.permute.xlu0 %912 }
0x13c2   :  { %v915_v36 = vmul.f32 %v1515_v10, %v913_v35  ;;  %v1400_v35 = vld [vmem:[#allocation7 + $0x40] sm:$0xff]  }
0x13c3   :  { %887 = vrot.lane.b32.xlu1 %v885_v33, %s1610_s4  ;;  %1341 = vmatprep.subr.bf16.mxu1 %v1400_v35 }
0x13c4   :  { %917 = vrot.lane.b32.xlu0 %v915_v36, %s1604_s2  ;;  %v1401_v36 = vld [vmem:[#allocation7] sm:$0xff]  }
0x13c8   :  { %924 = vrot.lane.b32.xlu0 %v1708_v9, %s1613_s13 }
0x1435   :  { %v2034_v38 = vpop.permute.xlu1 %887 }
0x1436   :  { %v918_v37 = vpop.permute.xlu0 %917 }
0x1437   :  { %920 = vst.msk [vmem:[#allocation2] sm:$0xff] %vm245_vm1, %v918_v37  ;;  %v1402_v37 = vld [vmem:[#allocation7 + $0x48] sm:$0xff]  }
0x1438   :  { %921 = vst.msk [vmem:[#allocation2] sm:$0xff] %vm247_vm2, %v2034_v38 }
0x143a   :  { %v925_v39 = vpop.permute.xlu0 %924 }
0x143b   :  { %927 = vst.msk [vmem:[#allocation2] sm:$0xff] %vm86_vm0, %v925_v39  ;;  %v1403_v39 = vld [vmem:[#allocation7 + $0x8] sm:$0xff]  }
0x1442   :  { %v928_v4 = vld [vmem:[#allocation2] sm:$0xff] }
0x1443   :  { %v929_v40 = vpack.c.bf16 %v928_v4, %v928_v4  ;;  %v1404_v4 = vld [vmem:[#allocation7 + $0x50] sm:$0xff]  }
0x1445   :  { %963 = vmatmul.mubr.bf16.vlgmr.msra.gmra.mrb[12].mxu1 %v929_v40  ;;  %v1405_v40 = vld [vmem:[#allocation7 + $0x10] sm:$0xff]  }
0x1446   :  { %1342 = vmatpush3.bf16.msra.mxu1 %v1401_v36 }
0x1447   :  { %1343 = vmatprep.subr.bf16.mxu1 %v1402_v37 }
0x144a   :  { %1344 = vmatpush3.bf16.msra.mxu1 %v1403_v39 }
0x144b   :  { %1345 = vmatprep.subr.bf16.mxu1 %v1404_v4 }
0x144e   :  { %1346 = vmatpush3.bf16.msra.mxu1 %v1405_v40 }
0x1518   :  { %v964_v41 = vpop.f32.mrb[12].mxu1 }
0x1519   :  { %v971_v42 = vadd.f32 %v1818_v49, %v964_v41  ;;  %v966_v43 = vpop.f32.mrb[13].mxu1  ;;  %v1406_v41 = vld [vmem:[#allocation7 + $0x58] sm:$0xff]  }
0x151a   :  { %v997_v9 = vadd.f32 %v1783_v26, %v966_v43  ;;  %v968_v44 = vpop.f32.mrb[14].mxu1  ;;  %1347 = vmatprep.subr.bf16.mxu1 %v1406_v41  ;;  %v1409_v43 = vld [vmem:[#allocation7 + $0x20] sm:$0xff]  }
0x151b   :  { %1520 = vtanh.f32 %v971_v42  ;;  %v969_v46 = vpop.f32.mrb[15].mxu1  ;;  %v1321_v50 = vmul.f32 -1.442695, %v971_v42  ;;  %v1408_v42 = vld [vmem:[#allocation7 + $0x60] sm:$0xff]   ;;  %v1411_v44 = vld [vmem:[#allocation7 + $0x28] sm:$0xff]  }
0x151c   :  { %1522 = vtanh.f32 %v997_v9  ;;  %v1322_v51 = vmul.f32 -1.442695, %v997_v9  ;;  %v1410_v9 = vld [vmem:[#allocation7 + $0x68] sm:$0xff]   ;;  %v1412_v46 = vld [vmem:[#allocation7 + $0x70] sm:$0xff]  }
0x151d   :  { %1524 = vpow2.f32 %v1321_v50 }
0x151e   :  { %1526 = vpow2.f32 %v1322_v51 }
0x1525   :  { %v1521_v47 = vpop.eup %1520 }
0x1526   :  { %v1523_v48 = vpop.eup %1522  ;;  %981 = vrot.lane.b32.xlu0 %v1521_v47, %s1608_s8  ;;  %v1413_v47 = vld [vmem:[#allocation7 + $0x30] sm:$0xff]  }
0x1527   :  { %1007 = vrot.lane.b32.xlu1 %v1523_v48, %s1608_s8  ;;  %v1525_v52 = vpop.eup %1524  ;;  %v1414_v48 = vld [vmem:[#allocation7 + $0x78] sm:$0xff]  }
0x1528   :  { %v1527_v53 = vpop.eup %1526  ;;  %v975_v54 = vadd.f32 1.0, %v1525_v52 }
0x1529   :  { %v1001_v55 = vadd.f32 1.0, %v1527_v53 }
0x152a   :  { %1528 = vrcp.f32 %v975_v54 }
0x152b   :  { %1530 = vrcp.f32 %v1001_v55 }
0x1534   :  { %v1529_v26 = vpop.eup %1528 }
0x1535   :  { %v1531_v57 = vpop.eup %1530  ;;  %v979_v62 = vmul.f32 %v1529_v26, %v879_v25 }
0x1536   :  { %v1005_v63 = vmul.f32 %v1531_v57, %v909_v28 }
0x1598   :  { %v982_v56 = vpop.permute.xlu0 %981 }
0x1599   :  { %v984_v58 = vmul.f32 %v1529_v26, %v982_v56  ;;  %v1008_v60 = vpop.permute.xlu1 %1007 }
0x159a   :  { %v1010_v61 = vmul.f32 %v1531_v57, %v1008_v60 }
0x159b   :  { %986 = vrot.lane.b32.xlu0 %v984_v58, %s1608_s8  ;;  %v1324_v58 = vld [vmem:[%s2084_s6] ss:$0 sm:$0xff] }
0x159c   :  { %1012 = vrot.lane.b32.xlu1 %v1010_v61, %s1608_s8 }
0x160d   :  { %v987_v1 = vpop.permute.xlu0 %986 }
0x160e   :  { %v989_v0 = vadd.f32 %v987_v1, %v979_v62  ;;  %v1013_v2 = vpop.permute.xlu1 %1012 }
0x160f   :  { %v1015_v15 = vadd.f32 %v1013_v2, %v1005_v63 }
0x1610   :  { %1532 = vtanh.f32 %v989_v0 }
0x1611   :  { %1534 = vtanh.f32 %v1015_v15 }
0x161a   :  { %v1533_v14 = vpop.eup %1532 }
0x161b   :  { %v1535_v17 = vpop.eup %1534  ;;  %992 = vrot.lane.b32.xlu0 %v1533_v14, %s1608_s8 }
0x161c   :  { %1018 = vrot.lane.b32.xlu1 %v1535_v17, %s1608_s8 }
0x168d   :  { %v993_v19 = vpop.permute.xlu0 %992 }
0x168e   :  { %v995_v18 = vmul.f32 %v1529_v26, %v993_v19  ;;  %v1019_v20 = vpop.permute.xlu1 %1018 }
0x168f   :  { %v1021_v21 = vmul.f32 %v1531_v57, %v1019_v20 }
0x1690   :  { %1028 = vrot.lane.b32.xlu0 %v995_v18, %s1610_s4 }
0x1691   :  { %1023 = vrot.lane.b32.xlu1 %v1021_v21, %s1604_s2 }
0x1702   :  { %v1029_v5 = vpop.permute.xlu0 %1028 }
0x1703   :  { %v1024_v22 = vpop.permute.xlu1 %1023 }
0x1704   :  { %1026 = vst.msk [vmem:[#allocation2] sm:$0xff] %vm245_vm1, %v1024_v22 }
0x1705   :  { %1031 = vst.msk [vmem:[#allocation2] sm:$0xff] %vm247_vm2, %v1029_v5 }
0x170c   :  { %v1032_v6 = vld [vmem:[#allocation2] sm:$0xff] }
0x170d   :  { %v1033_v7 = vpack.c.bf16 %v1032_v6, %v1032_v6 }
0x170f   :  { %1067 = vmatmul.mubr.bf16.vlgmr.msra.gmra.mrb[16].mxu0 %v1033_v7 }
0x17e2   :  { %v1068_v8 = vpop.f32.mrb[16].mxu0 }
0x17e3   :  { %v1074_v10 = vadd.f32 %v1818_v49, %v1068_v8  ;;  %v1070_v11 = vpop.f32.mrb[17].mxu0 }
0x17e4   :  { %v1071_v12 = vpop.f32.mrb[18].mxu0 }
0x17e5   :  { %1536 = vtanh.f32 %v1074_v10  ;;  %v1072_v13 = vpop.f32.mrb[19].mxu0  ;;  %v1323_v23 = vmul.f32 -1.442695, %v1074_v10 }
0x17e7   :  { %1538 = vpow2.f32 %v1323_v23 }
0x17ef   :  { %v1537_v16 = vpop.eup %1536 }
0x17f0   :  { %1084 = vrot.lane.b32.xlu1 %v1537_v16, %s1608_s8 }
0x17f1   :  { %v1539_v24 = vpop.eup %1538 }
0x17f2   :  { %v1078_v25 = vadd.f32 1.0, %v1539_v24 }
0x17f4   :  { %1540 = vrcp.f32 %v1078_v25 }
0x17fe   :  { %v1541_v27 = vpop.eup %1540 }
0x17ff   :  { %v1082_v49 = vmul.f32 %v1541_v27, %v989_v0 }
0x1862   :  { %v1085_v28 = vpop.permute.xlu1 %1084 }
0x1863   :  { %v1087_v29 = vmul.f32 %v1541_v27, %v1085_v28 }
0x1865   :  { %1089 = vrot.lane.b32.xlu0 %v1087_v29, %s1608_s8 }
0x1869   :  { %774 = vrot.lane.b32.xlu0 %v2003_v45, %s1604_s2 }
0x18d7   :  { %v1090_v30 = vpop.permute.xlu0 %1089 }
0x18d8   :  { %v1092_v32 = vadd.f32 %v1090_v30, %v1082_v49 }
0x18da   :  { %1542 = vtanh.f32 %v1092_v32 }
0x18db   :  { %v775_v33 = vpop.permute.xlu0 %774 }
0x18dc   :  { %777 = vst.msk [vmem:[#allocation4 + $0x8] sm:$0xff] %vm245_vm1, %v775_v33 }
0x18dd   :  { %890 = vst.msk [vmem:[#allocation4 + $0x8] sm:$0xff] %vm247_vm2, %v2034_v38  ;;  %v1407_v38 = vld [vmem:[#allocation7 + $0x18] sm:$0xff]  }
0x18de   :  { %996 = vst.msk [vmem:[#allocation4 + $0x8] sm:$0xff] %vm552_vm3, %v995_v18  ;;  %1348 = vmatpush3.bf16.msra.mxu1 %v1407_v38 }
0x18df   :  { %1349 = vmatprep.subr.bf16.mxu1 %v1408_v42 }
0x18e2   :  { %1350 = vmatpush3.bf16.msra.mxu1 %v1409_v43 }
0x18e3   :  { %1351 = vmatprep.subr.bf16.mxu1 %v1410_v9 }
0x18e4   :  { %v1543_v45 = vpop.eup %1542 }
0x18e5   :  { %1095 = vrot.lane.b32.xlu1 %v1543_v45, %s1608_s8 }
0x18e6   :  { %1352 = vmatpush3.bf16.msra.mxu1 %v1411_v44 }
0x18e7   :  { %1353 = vmatprep.subr.bf16.mxu1 %v1412_v46 }
0x18e9   :  { %330 = vrot.lane.b32.xlu1 %v1835_v34, %s1604_s2  ;;  %v1415_v34 = vld [vmem:[#allocation7 + $0x38] sm:$0xff]  }
0x18ea   :  { %1354 = vmatpush3.bf16.msra.mxu1 %v1413_v47 }
0x18eb   :  { %1355 = vmatprep.subr.bf16.mxu1 %v1414_v48 }
0x18ed   :  { %660 = vrot.lane.b32.xlu1 %v1962_v59, %s1608_s8 }
0x18ee   :  { %1356 = vmatpush3.bf16.msra.mxu1 %v1415_v34 }
0x1957   :  { %v1096_v50 = vpop.permute.xlu1 %1095 }
0x1958   :  { %v1098_v51 = vmul.f32 %v1541_v27, %v1096_v50 }
0x195a   :  { %1100 = vrot.lane.b32.xlu0 %v1098_v51, %s1608_s8 }
0x195b   :  { %v331_v59 = vpop.permute.xlu1 %330 }
0x195c   :  { %333 = vst.msk [vmem:[#allocation4] sm:$0xff] %vm245_vm1, %v331_v59 }
0x195d   :  { %446 = vst.msk [vmem:[#allocation4] sm:$0xff] %vm247_vm2, %v1881_v31 }
0x195e   :  { %553 = vst.msk [vmem:[#allocation4] sm:$0xff] %vm552_vm3, %v1920_v3 }
0x195f   :  { %v661_v52 = vpop.permute.xlu1 %660 }
0x1960   :  { %664 = vst.msk [vmem:[#allocation4] sm:$0xff] %vm663_vm4, %v661_v52 }
0x1967   :  { %v1104_v54 = vld [vmem:[#allocation4] sm:$0xff] }
0x1968   :  { %v1106_v56 = vpack.c.bf16 %v1104_v54, %v1104_v54 }
0x19cc   :  { %v1101_v53 = vpop.permute.xlu0 %1100 }
0x19cd   :  { %1103 = vst.msk [vmem:[#allocation4 + $0x8] sm:$0xff] %vm663_vm4, %v1101_v53 }
0x19d4   :  { %v1105_v55 = vld [vmem:[#allocation4 + $0x8] sm:$0xff] }
0x19d5   :  { %v1107_v26 = vpack.c.bf16 %v1105_v55, %v1105_v55 }
0x19d7   :  { %1275 = vmatprep.mubr.bf16.mxu1 %v1107_v26 }
0x19d8   :  { %1276 = vmatmul.mubr.bf16.vlgmr.msra.gmra.mrb[16].mxu1 %v1106_v56 }
0x1aab   :  { %v1357_v57 = vpop.f32.mrb[16].mxu1 }
0x1aac   :  { %v1358_v31 = vpop.f32.mrb[17].mxu1 }
0x1aad   :  { %v1359_v60 = vadd.f32 %v1358_v31, %v1357_v57  ;;  %v1360_v61 = vpop.f32.mrb[18].mxu1 }
0x1aae   :  { %v1361_v62 = vpop.f32.mrb[19].mxu1 }
0x1aaf   :  { %v1278_v3 = vadd.f32 %v1359_v60, %v1324_v58 }
0x1ab1   :  { %1283 = vst [vmem:[%s2085_s7] sm:$0xff] %v1278_v3 }
0x1ab2   :  { %1288 = vsyncpa [#allocation6], 1 }
0x1ab3   :  { %1289 = vsyncpa [#allocation8], 1 }

</bundles_post_ra>
